<compile_context>
chip_gen: v5e
topology: v5e:2x2
jax: 0.10.0
libtpu: 0.0.40
codegen_flags: <defaults>
</compile_context>

<pallas_src>
import functools

import jax
import jax.numpy as jnp
from jax.experimental import pallas as pl
from jax.experimental.pallas import tpu as pltpu


# ----------------------- Kernel A: depthwise conv + BN partials --------------------- #
def depthwise_kernel(x_ref, w_ref, b_ref, dw_ref, sum_ref, cssq_ref, *scratch,
                     K, stride, dilation, padding, H, W, Ho, Wo, HW_pad, use_scratch):
    # x_ref   : (1, Ct, H, W)     unpadded input tile (one batch element, one channel tile)
    # w_ref   : (Ct, K*K)         depthwise weights (compact, one vreg)
    # b_ref   : (Ct, 1)           depthwise bias
    # dw_ref  : (1, Ct, HW_pad)   lane-dense depthwise output (handoff dtype)
    # sum_ref : (1, Ct, 1)        per-(n, channel) sum                       (BN partial)
    # cssq_ref: (1, Ct, 1)        per-(n, channel) centered sum of squares   (BN partial)
    # scratch : optional (Ct, Hp, Wp_s) VMEM zero-halo image
    Ct = w_ref.shape[0]
    HW = Ho * Wo

    if use_scratch:
        xpad_ref = scratch[0]
        Hp = xpad_ref.shape[1]
        Wp_s = xpad_ref.shape[2]
        zdt = xpad_ref.dtype
        # Zero only the halo strips (cheap) and copy the interior.  Done every grid step so
        # it stays correct when the "parallel" grid axes are sharded across TensorCores.
        if padding > 0:
            xpad_ref[:, pl.ds(0, padding), :] = jnp.zeros((Ct, padding, Wp_s), zdt)
        bot = Hp - padding - H
        if bot > 0:
            xpad_ref[:, pl.ds(padding + H, bot), :] = jnp.zeros((Ct, bot, Wp_s), zdt)
        if padding > 0:
            xpad_ref[:, :, pl.ds(0, padding)] = jnp.zeros((Ct, Hp, padding), zdt)
        rgt = Wp_s - padding - W
        if rgt > 0:
            xpad_ref[:, :, pl.ds(padding + W, rgt)] = jnp.zeros((Ct, Hp, rgt), zdt)
        xpad_ref[:, pl.ds(padding, H), pl.ds(padding, W)] = x_ref[0]

    w = w_ref[...]                              # loaded once; taps sliced from registers
    b = b_ref[...].astype(jnp.float32)          # (Ct, 1)

    def patch_at(h0, w0):
        if stride == 1:
            if use_scratch:
                return xpad_ref[:, pl.ds(h0, Ho), pl.ds(w0, Wo)]
            return x_ref[0, :, pl.ds(h0, Ho), pl.ds(w0, Wo)]
        # stride > 1: keep the stride off the lane axis — sublane-strided rows plus a dense
        # lane load followed by a reshape-select for the columns (halo scratch is sized so
        # the dense column load never reads OOB).
        if use_scratch:
            rows = xpad_ref[:, pl.ds(h0, Ho, stride), pl.ds(w0, Wo * stride)]
        else:
            rows = x_ref[0, :, pl.ds(h0, Ho, stride), pl.ds(w0, Wo * stride)]
        return rows.reshape(Ct, Ho, Wo, stride)[..., 0]

    acc = jnp.zeros((Ct, Ho, Wo), jnp.float32)  # register-resident (c_tile budgeted)
    for kh in range(K):
        for kw in range(K):
            h0 = kh * dilation
            w0 = kw * dilation
            tap = w[:, kh * K + kw][:, None, None]            # (Ct, 1, 1)
            acc = acc + patch_at(h0, w0).astype(jnp.float32) * tap

    dw = acc.reshape(Ct, HW) + b                              # lane-dense (Ct, HW), f32
    if HW_pad == HW:
        dw_ref[0] = dw.astype(dw_ref.dtype)
    else:
        dw_ref[0, :, pl.ds(0, HW)] = dw.astype(dw_ref.dtype)
        dw_ref[0, :, pl.ds(HW, HW_pad - HW)] = jnp.zeros((Ct, HW_pad - HW), dw_ref.dtype)

    # Centered second-moment partials (robust batch-variance via Chan's formula in wrapper).
    s = jnp.sum(dw, axis=1, keepdims=True)                    # (Ct, 1)
    m = s * (1.0 / HW)
    c = dw - m
    sum_ref[0] = s
    cssq_ref[0] = jnp.sum(c * c, axis=1, keepdims=True)


# --------------- Kernel B: pointwise 1x1 matmul (BN folded into weights) ------------- #
def pointwise_kernel(x_ref, w_ref, b_ref, o_ref):
    # x_ref: (1, C, T) handoff dtype   w_ref: (Cout, C) same dtype   b_ref: (Cout, 1) f32
    # o_ref: (1, Cout, T) f32
    y = jnp.dot(w_ref[...], x_ref[0], preferred_element_type=jnp.float32)   # one MXU matmul
    o_ref[0] = (y + b_ref[...]).astype(o_ref.dtype)


# ------------------------------------ wrapper ---------------------------------------- #
def _vmem_capacity_bytes():
    try:
        return int(pltpu.get_tpu_info().vmem_capacity_bytes)
    except Exception:
        return 64 * 1024 * 1024   # conservative fallback (v7x per-TensorCore VMEM)


def sep_conv2d(x, dw_w, dw_b, gamma, beta, pw_w, pw_b, *,
               kernel_size, stride=1, padding=0, dilation=1, eps=1e-5,
               interm_dtype=jnp.bfloat16):
    """x: (N, C, H, W) NCHW.  dw_w: (C, K, K), dw_b: (C,), pw_w: (Cout, C), pw_b: (Cout,).

    interm_dtype controls the depthwise->pointwise handoff dtype; bf16 (default) halves the
    HBM traffic of the largest intermediate (Kernel B is HBM-bound on every generation).
    """
    N, C, H, W = x.shape
    K = kernel_size
    Ho = (H + 2 * padding - dilation * (K - 1) - 1) // stride + 1
    Wo = (W + 2 * padding - dilation * (K - 1) - 1) // stride + 1
    HW = Ho * Wo
    HW_pad = HW if HW % 128 == 0 else ((HW + 127) // 128) * 128   # lane-dense handoff/output
    Cout = pw_w.shape[0]

    Hp = H + 2 * padding
    Wp = W + 2 * padding
    # For stride>1 the in-kernel dense column load needs a few extra zero columns.
    extra_w = max(0, (K - 1) * dilation + Wo * stride - Wp) if stride > 1 else 0
    Wp_s = Wp + extra_w
    use_scratch = (padding > 0) or (extra_w > 0)

    # VMEM limit / tile byte budget from the chip's real capacity (64 MiB v7x, 128 MiB v5e/v6e).
    vmem_cap = _vmem_capacity_bytes()
    vmem_limit = max(32 * 1024 * 1024, min((vmem_cap * 3) // 4, 96 * 1024 * 1024))
    blk_budget = vmem_limit // 2

    in_item = jnp.dtype(x.dtype).itemsize
    out_item = jnp.dtype(interm_dtype).itemsize

    w_taps = dw_w.reshape(C, K * K)            # compact weights: fits in one vreg
    b_dw = dw_b[:, None]                       # (C, 1)

    # ---- Kernel A channel tiling: keep the f32 accumulator register-resident & fit VMEM ----
    acc_budget = 96 * 1024                     # ~64 vregs = 256 KiB; leave headroom

    def a_bytes(ct):
        x_blk = ct * H * W * in_item * 2                       # double-buffered input block
        pad_scr = ct * Hp * Wp_s * in_item if use_scratch else 0
        out_blk = ct * HW_pad * out_item * 2                   # double-buffered dw output
        return x_blk + pad_scr + out_blk

    c_cands = sorted({C} | {c for c in (512, 256, 128, 64, 32, 16, 8)
                            if C % c == 0 and c < C}, reverse=True)
    c_fit = [c for c in c_cands
             if c * Ho * Wo * 4 <= acc_budget and a_bytes(c) <= blk_budget]
    c_tile = c_fit[0] if c_fit else c_cands[-1]
    if N == 1 and c_tile == C:                 # v7x: give the 2nd TensorCore work if possible
        smaller = [c for c in c_fit if c < C]
        if smaller:
            c_tile = smaller[0]

    kernel_a = functools.partial(
        depthwise_kernel, K=K, stride=stride, dilation=dilation, padding=padding,
        H=H, W=W, Ho=Ho, Wo=Wo, HW_pad=HW_pad, use_scratch=use_scratch)
    scratch_a = [pltpu.VMEM((c_tile, Hp, Wp_s), x.dtype)] if use_scratch else []

    dw_out, sums, cssq = pl.pallas_call(
        kernel_a,
        out_shape=(
            jax.ShapeDtypeStruct((N, C, HW_pad), interm_dtype),
            jax.ShapeDtypeStruct((N, C, 1), jnp.float32),
            jax.ShapeDtypeStruct((N, C, 1), jnp.float32),
        ),
        grid=(N, C // c_tile),
        in_specs=[
            pl.BlockSpec((1, c_tile, H, W), lambda n, c: (n, c, 0, 0)),
            pl.BlockSpec((c_tile, K * K), lambda n, c: (c, 0)),
            pl.BlockSpec((c_tile, 1), lambda n, c: (c, 0)),
        ],
        out_specs=(
            pl.BlockSpec((1, c_tile, HW_pad), lambda n, c: (n, c, 0)),
            pl.BlockSpec((1, c_tile, 1), lambda n, c: (n, c, 0)),
            pl.BlockSpec((1, c_tile, 1), lambda n, c: (n, c, 0)),
        ),
        scratch_shapes=scratch_a,
        compiler_params=pltpu.CompilerParams(
            dimension_semantics=("parallel", "parallel"),
            vmem_limit_bytes=vmem_limit),
    )(x, w_taps, b_dw)

    # ---- Batch statistics (O(C) work) via Chan's parallel-variance combination ----
    tile_sum = sums[:, :, 0]                                   # (N, C)
    tile_cssq = cssq[:, :, 0]                                  # (N, C)
    cnt = float(N * HW)
    tile_mean = tile_sum / float(HW)
    mean = jnp.sum(tile_sum, axis=0) / cnt                     # (C,)
    m2 = jnp.sum(tile_cssq, axis=0) + float(HW) * jnp.sum((tile_mean - mean[None, :]) ** 2, axis=0)
    var = jnp.maximum(m2 / cnt, 0.0)                           # biased (training-mode) variance
    scale = gamma * jax.lax.rsqrt(var + eps)
    shift = beta - mean * scale

    # Fold BN into the pointwise conv: out = (pw_w * scale) @ dw + (pw_w @ shift + pw_b).
    w_fold = (pw_w * scale[None, :]).astype(interm_dtype)      # (Cout, C)
    b_fold = (pw_w @ shift + pw_b)[:, None].astype(jnp.float32)

    # ---- Kernel B spatial tiling from the VMEM byte budget (lane-dense, multiple of 128) ----
    def b_bytes(t):
        return (C * out_item + Cout * 4) * t * 2 + Cout * C * out_item + Cout * 4

    hw_cands = [m * 128 for m in range(HW_pad // 128, 0, -1) if HW_pad % (m * 128) == 0]
    hw_fit = [t for t in hw_cands if b_bytes(t) <= blk_budget] or [hw_cands[-1]]
    hw_tile = hw_fit[0]
    if N * (HW_pad // hw_tile) < 2:            # v7x: >= 2 grid steps on a parallel axis
        multi = [t for t in hw_fit if HW_pad // t >= 2]
        if multi:
            hw_tile = multi[0]

    out_flat = pl.pallas_call(
        pointwise_kernel,
        out_shape=jax.ShapeDtypeStruct((N, Cout, HW_pad), jnp.float32),
        grid=(N, HW_pad // hw_tile),
        in_specs=[
            pl.BlockSpec((1, C, hw_tile), lambda n, t: (n, 0, t)),
            pl.BlockSpec((Cout, C), lambda n, t: (0, 0)),
            pl.BlockSpec((Cout, 1), lambda n, t: (0, 0)),
        ],
        out_specs=pl.BlockSpec((1, Cout, hw_tile), lambda n, t: (n, 0, t)),
        compiler_params=pltpu.CompilerParams(
            dimension_semantics=("parallel", "parallel"),
            vmem_limit_bytes=vmem_limit),
    )(dw_out, w_fold, b_fold)

    if HW_pad != HW:
        out_flat = out_flat[:, :, :HW]
    # NCHW result to match the module API; downstream consumers that can accept the
    # lane-dense (N, Cout, HW) layout should take out_flat directly to skip this relayout.
    return out_flat.reshape(N, Cout, Ho, Wo)


# -------------------------------- pure-JAX reference --------------------------------- #
def sep_conv2d_ref(x, dw_w, dw_b, gamma, beta, pw_w, pw_b, *,
                   kernel_size, stride=1, padding=0, dilation=1, eps=1e-5):
    N, C, H, W = x.shape
    K = kernel_size
    dn = jax.lax.conv_dimension_numbers(x.shape, (C, 1, K, K), ("NCHW", "OIHW", "NCHW"))
    dw = jax.lax.conv_general_dilated(
        x, dw_w[:, None, :, :], (stride, stride),
        [(padding, padding), (padding, padding)],
        rhs_dilation=(dilation, dilation),
        dimension_numbers=dn, feature_group_count=C,
    ) + dw_b[None, :, None, None]
    mean = dw.mean(axis=(0, 2, 3), keepdims=True)
    var = ((dw - mean) ** 2).mean(axis=(0, 2, 3), keepdims=True)
    xn = (dw - mean) / jnp.sqrt(var + eps) * gamma[None, :, None, None] + beta[None, :, None, None]
    out = jnp.einsum("oc,nchw->nohw", pw_w, xn) + pw_b[None, :, None, None]
    return out


if __name__ == "__main__":
    # Small shapes consistent with the module: N=2, C_in=4, C_out=8, 16x16, k=3, pad=1.
    N, Cin, Cout, H, W = 2, 4, 8, 16, 16
    K, stride, padding, dilation = 3, 1, 1, 1

    key = jax.random.PRNGKey(0)
    k1, k2, k3, k4, k5, k6, k7 = jax.random.split(key, 7)
    x = jax.random.normal(k1, (N, Cin, H, W), jnp.float32)
    dw_w = jax.random.normal(k2, (Cin, K, K), jnp.float32) * 0.2
    dw_b = jax.random.normal(k3, (Cin,), jnp.float32) * 0.1
    gamma = 1.0 + 0.1 * jax.random.normal(k4, (Cin,), jnp.float32)
    beta = 0.1 * jax.random.normal(k5, (Cin,), jnp.float32)
    pw_w = jax.random.normal(k6, (Cout, Cin), jnp.float32) * 0.3
    pw_b = jax.random.normal(k7, (Cout,), jnp.float32) * 0.1

    fn = jax.jit(functools.partial(sep_conv2d, kernel_size=K, stride=stride,
                                   padding=padding, dilation=dilation))
    out = jax.block_until_ready(fn(x, dw_w, dw_b, gamma, beta, pw_w, pw_b))

    ref = sep_conv2d_ref(x, dw_w, dw_b, gamma, beta, pw_w, pw_b,
                         kernel_size=K, stride=stride, padding=padding, dilation=dilation)
    assert out.shape == (N, Cout, H, W)
    err = float(jnp.max(jnp.abs(out - ref)))
    # bf16 handoff + bf16 folded weights with f32 MXU accumulation -> slightly looser
    # tolerance than a pure-f32 pipeline.
    assert jnp.allclose(out, ref, rtol=4e-2, atol=4e-2), err

    print("KERNEL_OK")
</pallas_src>

<mosaic_0001>
module attributes {stable_mosaic.version = 11 : i64} {
  func.func @depthwise_kernel(%arg0: i32, %arg1: i32, %arg2: memref<1x4x16x16xf32, #tpu.memory_space<vmem>>, %arg3: memref<4x9xf32, #tpu.memory_space<vmem>>, %arg4: memref<4x1xf32, #tpu.memory_space<vmem>>, %arg5: memref<1x4x256xbf16, #tpu.memory_space<vmem>>, %arg6: memref<1x4x1xf32, #tpu.memory_space<vmem>>, %arg7: memref<1x4x1xf32, #tpu.memory_space<vmem>>, %arg8: memref<4x18x18xf32, #tpu.memory_space<vmem>>) attributes {dimension_semantics = [#tpu.dimension_semantics<parallel>, #tpu.dimension_semantics<parallel>], iteration_bounds = array<i64: 2, 1>, scalar_prefetch = 0 : i64, scratch_operands = 1 : i64, tpu.core_type = #tpu.core_type<tc>, window_params = [{transform_indices = @transform_0, window_bounds = array<i64: 1, 4, 16, 16>}, {transform_indices = @transform_1, window_bounds = array<i64: 4, 9>}, {transform_indices = @transform_2, window_bounds = array<i64: 4, 1>}, {transform_indices = @transform_3, window_bounds = array<i64: 1, 4, 256>}, {transform_indices = @transform_4, window_bounds = array<i64: 1, 4, 1>}, {transform_indices = @transform_5, window_bounds = array<i64: 1, 4, 1>}]} {
    %cst = arith.constant 0.000000e+00 : f32
    %0 = vector.broadcast %cst : f32 to vector<4x1x18xf32>
    %c0 = arith.constant 0 : index
    %c0_0 = arith.constant 0 : index
    %c0_1 = arith.constant 0 : index
    %1 = vector.load %arg8[%c0, %c0_0, %c0_1] : memref<4x18x18xf32, #tpu.memory_space<vmem>>, vector<4x1x18xf32>
    tpu.vector_store %arg8[%c0, %c0_0, %c0_1], %0 {strides = array<i32>} : memref<4x18x18xf32, #tpu.memory_space<vmem>>, vector<4x1x18xf32>,
    %cst_2 = arith.constant 0.000000e+00 : f32
    %2 = vector.broadcast %cst_2 : f32 to vector<4x1x18xf32>
    %c0_3 = arith.constant 0 : index
    %c17 = arith.constant 17 : index
    %c0_4 = arith.constant 0 : index
    %3 = vector.load %arg8[%c0_3, %c17, %c0_4] : memref<4x18x18xf32, #tpu.memory_space<vmem>>, vector<4x1x18xf32>
    tpu.vector_store %arg8[%c0_3, %c17, %c0_4], %2 {strides = array<i32>} : memref<4x18x18xf32, #tpu.memory_space<vmem>>, vector<4x1x18xf32>,
    %cst_5 = arith.constant 0.000000e+00 : f32
    %4 = vector.broadcast %cst_5 : f32 to vector<4x18x1xf32>
    %c0_6 = arith.constant 0 : index
    %c0_7 = arith.constant 0 : index
    %c0_8 = arith.constant 0 : index
    %5 = vector.load %arg8[%c0_6, %c0_7, %c0_8] : memref<4x18x18xf32, #tpu.memory_space<vmem>>, vector<4x18x1xf32>
    tpu.vector_store %arg8[%c0_6, %c0_7, %c0_8], %4 {strides = array<i32>} : memref<4x18x18xf32, #tpu.memory_space<vmem>>, vector<4x18x1xf32>,
    %cst_9 = arith.constant 0.000000e+00 : f32
    %6 = vector.broadcast %cst_9 : f32 to vector<4x18x1xf32>
    %c0_10 = arith.constant 0 : index
    %c0_11 = arith.constant 0 : index
    %c17_12 = arith.constant 17 : index
    %7 = vector.load %arg8[%c0_10, %c0_11, %c17_12] : memref<4x18x18xf32, #tpu.memory_space<vmem>>, vector<4x18x1xf32>
    tpu.vector_store %arg8[%c0_10, %c0_11, %c17_12], %6 {strides = array<i32>} : memref<4x18x18xf32, #tpu.memory_space<vmem>>, vector<4x18x1xf32>,
    %c0_13 = arith.constant 0 : index
    %c0_14 = arith.constant 0 : index
    %c0_15 = arith.constant 0 : index
    %c0_16 = arith.constant 0 : index
    %8 = vector.load %arg2[%c0_13, %c0_14, %c0_15, %c0_16] : memref<1x4x16x16xf32, #tpu.memory_space<vmem>>, vector<1x4x16x16xf32>
    %9 = vector.shape_cast %8 : vector<1x4x16x16xf32> to vector<4x16x16xf32>
    %c0_17 = arith.constant 0 : index
    %c1 = arith.constant 1 : index
    %c1_18 = arith.constant 1 : index
    %10 = vector.load %arg8[%c0_17, %c1, %c1_18] : memref<4x18x18xf32, #tpu.memory_space<vmem>>, vector<4x16x16xf32>
    tpu.vector_store %arg8[%c0_17, %c1, %c1_18], %9 {strides = array<i32>} : memref<4x18x18xf32, #tpu.memory_space<vmem>>, vector<4x16x16xf32>,
    %c0_19 = arith.constant 0 : index
    %c0_20 = arith.constant 0 : index
    %11 = vector.load %arg3[%c0_19, %c0_20] : memref<4x9xf32, #tpu.memory_space<vmem>>, vector<4x9xf32>
    %c0_21 = arith.constant 0 : index
    %c0_22 = arith.constant 0 : index
    %12 = vector.load %arg4[%c0_21, %c0_22] : memref<4x1xf32, #tpu.memory_space<vmem>>, vector<4x1xf32>
    %cst_23 = arith.constant 0.000000e+00 : f32
    %13 = vector.broadcast %cst_23 : f32 to vector<4x16x16xf32>
    %14 = vector.extract_strided_slice %11 {offsets = [0, 0], sizes = [4, 1], strides = [1, 1]} : vector<4x9xf32> to vector<4x1xf32>
    %15 = vector.shape_cast %14 : vector<4x1xf32> to vector<4xf32>
    %16 = vector.shape_cast %15 : vector<4xf32> to vector<4x1x1xf32>
    %c0_24 = arith.constant 0 : index
    %c0_25 = arith.constant 0 : index
    %c0_26 = arith.constant 0 : index
    %17 = vector.load %arg8[%c0_24, %c0_25, %c0_26] : memref<4x18x18xf32, #tpu.memory_space<vmem>>, vector<4x16x16xf32>
    %18 = vector.broadcast %16 : vector<4x1x1xf32> to vector<4x16x16xf32>
    %19 = arith.mulf %17, %18 : vector<4x16x16xf32>
    %20 = arith.addf %13, %19 : vector<4x16x16xf32>
    %21 = vector.extract_strided_slice %11 {offsets = [0, 1], sizes = [4, 1], strides = [1, 1]} : vector<4x9xf32> to vector<4x1xf32>
    %22 = vector.shape_cast %21 : vector<4x1xf32> to vector<4xf32>
    %23 = vector.shape_cast %22 : vector<4xf32> to vector<4x1x1xf32>
    %c0_27 = arith.constant 0 : index
    %c0_28 = arith.constant 0 : index
    %c1_29 = arith.constant 1 : index
    %24 = vector.load %arg8[%c0_27, %c0_28, %c1_29] : memref<4x18x18xf32, #tpu.memory_space<vmem>>, vector<4x16x16xf32>
    %25 = vector.broadcast %23 : vector<4x1x1xf32> to vector<4x16x16xf32>
    %26 = arith.mulf %24, %25 : vector<4x16x16xf32>
    %27 = arith.addf %20, %26 : vector<4x16x16xf32>
    %28 = vector.extract_strided_slice %11 {offsets = [0, 2], sizes = [4, 1], strides = [1, 1]} : vector<4x9xf32> to vector<4x1xf32>
    %29 = vector.shape_cast %28 : vector<4x1xf32> to vector<4xf32>
    %30 = vector.shape_cast %29 : vector<4xf32> to vector<4x1x1xf32>
    %c0_30 = arith.constant 0 : index
    %c0_31 = arith.constant 0 : index
    %c2 = arith.constant 2 : index
    %31 = vector.load %arg8[%c0_30, %c0_31, %c2] : memref<4x18x18xf32, #tpu.memory_space<vmem>>, vector<4x16x16xf32>
    %32 = vector.broadcast %30 : vector<4x1x1xf32> to vector<4x16x16xf32>
    %33 = arith.mulf %31, %32 : vector<4x16x16xf32>
    %34 = arith.addf %27, %33 : vector<4x16x16xf32>
    %35 = vector.extract_strided_slice %11 {offsets = [0, 3], sizes = [4, 1], strides = [1, 1]} : vector<4x9xf32> to vector<4x1xf32>
    %36 = vector.shape_cast %35 : vector<4x1xf32> to vector<4xf32>
    %37 = vector.shape_cast %36 : vector<4xf32> to vector<4x1x1xf32>
    %c0_32 = arith.constant 0 : index
    %c1_33 = arith.constant 1 : index
    %c0_34 = arith.constant 0 : index
    %38 = vector.load %arg8[%c0_32, %c1_33, %c0_34] : memref<4x18x18xf32, #tpu.memory_space<vmem>>, vector<4x16x16xf32>
    %39 = vector.broadcast %37 : vector<4x1x1xf32> to vector<4x16x16xf32>
    %40 = arith.mulf %38, %39 : vector<4x16x16xf32>
    %41 = arith.addf %34, %40 : vector<4x16x16xf32>
    %42 = vector.extract_strided_slice %11 {offsets = [0, 4], sizes = [4, 1], strides = [1, 1]} : vector<4x9xf32> to vector<4x1xf32>
    %43 = vector.shape_cast %42 : vector<4x1xf32> to vector<4xf32>
    %44 = vector.shape_cast %43 : vector<4xf32> to vector<4x1x1xf32>
    %c0_35 = arith.constant 0 : index
    %c1_36 = arith.constant 1 : index
    %c1_37 = arith.constant 1 : index
    %45 = vector.load %arg8[%c0_35, %c1_36, %c1_37] : memref<4x18x18xf32, #tpu.memory_space<vmem>>, vector<4x16x16xf32>
    %46 = vector.broadcast %44 : vector<4x1x1xf32> to vector<4x16x16xf32>
    %47 = arith.mulf %45, %46 : vector<4x16x16xf32>
    %48 = arith.addf %41, %47 : vector<4x16x16xf32>
    %49 = vector.extract_strided_slice %11 {offsets = [0, 5], sizes = [4, 1], strides = [1, 1]} : vector<4x9xf32> to vector<4x1xf32>
    %50 = vector.shape_cast %49 : vector<4x1xf32> to vector<4xf32>
    %51 = vector.shape_cast %50 : vector<4xf32> to vector<4x1x1xf32>
    %c0_38 = arith.constant 0 : index
    %c1_39 = arith.constant 1 : index
    %c2_40 = arith.constant 2 : index
    %52 = vector.load %arg8[%c0_38, %c1_39, %c2_40] : memref<4x18x18xf32, #tpu.memory_space<vmem>>, vector<4x16x16xf32>
    %53 = vector.broadcast %51 : vector<4x1x1xf32> to vector<4x16x16xf32>
    %54 = arith.mulf %52, %53 : vector<4x16x16xf32>
    %55 = arith.addf %48, %54 : vector<4x16x16xf32>
    %56 = vector.extract_strided_slice %11 {offsets = [0, 6], sizes = [4, 1], strides = [1, 1]} : vector<4x9xf32> to vector<4x1xf32>
    %57 = vector.shape_cast %56 : vector<4x1xf32> to vector<4xf32>
    %58 = vector.shape_cast %57 : vector<4xf32> to vector<4x1x1xf32>
    %c0_41 = arith.constant 0 : index
    %c2_42 = arith.constant 2 : index
    %c0_43 = arith.constant 0 : index
    %59 = vector.load %arg8[%c0_41, %c2_42, %c0_43] : memref<4x18x18xf32, #tpu.memory_space<vmem>>, vector<4x16x16xf32>
    %60 = vector.broadcast %58 : vector<4x1x1xf32> to vector<4x16x16xf32>
    %61 = arith.mulf %59, %60 : vector<4x16x16xf32>
    %62 = arith.addf %55, %61 : vector<4x16x16xf32>
    %63 = vector.extract_strided_slice %11 {offsets = [0, 7], sizes = [4, 1], strides = [1, 1]} : vector<4x9xf32> to vector<4x1xf32>
    %64 = vector.shape_cast %63 : vector<4x1xf32> to vector<4xf32>
    %65 = vector.shape_cast %64 : vector<4xf32> to vector<4x1x1xf32>
    %c0_44 = arith.constant 0 : index
    %c2_45 = arith.constant 2 : index
    %c1_46 = arith.constant 1 : index
    %66 = vector.load %arg8[%c0_44, %c2_45, %c1_46] : memref<4x18x18xf32, #tpu.memory_space<vmem>>, vector<4x16x16xf32>
    %67 = vector.broadcast %65 : vector<4x1x1xf32> to vector<4x16x16xf32>
    %68 = arith.mulf %66, %67 : vector<4x16x16xf32>
    %69 = arith.addf %62, %68 : vector<4x16x16xf32>
    %70 = vector.extract_strided_slice %11 {offsets = [0, 8], sizes = [4, 1], strides = [1, 1]} : vector<4x9xf32> to vector<4x1xf32>
    %71 = vector.shape_cast %70 : vector<4x1xf32> to vector<4xf32>
    %72 = vector.shape_cast %71 : vector<4xf32> to vector<4x1x1xf32>
    %c0_47 = arith.constant 0 : index
    %c2_48 = arith.constant 2 : index
    %c2_49 = arith.constant 2 : index
    %73 = vector.load %arg8[%c0_47, %c2_48, %c2_49] : memref<4x18x18xf32, #tpu.memory_space<vmem>>, vector<4x16x16xf32>
    %74 = vector.broadcast %72 : vector<4x1x1xf32> to vector<4x16x16xf32>
    %75 = arith.mulf %73, %74 : vector<4x16x16xf32>
    %76 = arith.addf %69, %75 : vector<4x16x16xf32>
    %77 = vector.shape_cast %76 : vector<4x16x16xf32> to vector<4x256xf32>
    %78 = vector.broadcast %12 : vector<4x1xf32> to vector<4x256xf32>
    %79 = arith.addf %77, %78 : vector<4x256xf32>
    %80 = arith.truncf %79 : vector<4x256xf32> to vector<4x256xbf16>
    %c0_50 = arith.constant 0 : index
    %c0_51 = arith.constant 0 : index
    %c0_52 = arith.constant 0 : index
    %81 = vector.load %arg5[%c0_50, %c0_51, %c0_52] : memref<1x4x256xbf16, #tpu.memory_space<vmem>>, vector<1x4x256xbf16>
    %82 = vector.shape_cast %81 : vector<1x4x256xbf16> to vector<4x256xbf16>
    %83 = vector.shape_cast %80 : vector<4x256xbf16> to vector<1x4x256xbf16>
    tpu.vector_store %arg5[%c0_50, %c0_51, %c0_52], %83 {strides = array<i32>} : memref<1x4x256xbf16, #tpu.memory_space<vmem>>, vector<1x4x256xbf16>,
    %cst_53 = arith.constant dense<0.000000e+00> : vector<4xf32>
    %84 = vector.multi_reduction <add>, %79, %cst_53 [1] : vector<4x256xf32> to vector<4xf32>
    %85 = vector.shape_cast %84 : vector<4xf32> to vector<4x1xf32>
    %cst_54 = arith.constant 3.906250e-03 : f32
    %86 = vector.broadcast %cst_54 : f32 to vector<4x1xf32>
    %87 = arith.mulf %85, %86 : vector<4x1xf32>
    %88 = vector.broadcast %87 : vector<4x1xf32> to vector<4x256xf32>
    %89 = arith.subf %79, %88 : vector<4x256xf32>
    %c0_55 = arith.constant 0 : index
    %c0_56 = arith.constant 0 : index
    %c0_57 = arith.constant 0 : index
    %90 = vector.load %arg6[%c0_55, %c0_56, %c0_57] : memref<1x4x1xf32, #tpu.memory_space<vmem>>, vector<1x4x1xf32>
    %91 = vector.shape_cast %90 : vector<1x4x1xf32> to vector<4x1xf32>
    %92 = vector.shape_cast %85 : vector<4x1xf32> to vector<1x4x1xf32>
    tpu.vector_store %arg6[%c0_55, %c0_56, %c0_57], %92 {strides = array<i32>} : memref<1x4x1xf32, #tpu.memory_space<vmem>>, vector<1x4x1xf32>,
    %93 = arith.mulf %89, %89 : vector<4x256xf32>
    %cst_58 = arith.constant dense<0.000000e+00> : vector<4xf32>
    %94 = vector.multi_reduction <add>, %93, %cst_58 [1] : vector<4x256xf32> to vector<4xf32>
    %95 = vector.shape_cast %94 : vector<4xf32> to vector<4x1xf32>
    %c0_59 = arith.constant 0 : index
    %c0_60 = arith.constant 0 : index
    %c0_61 = arith.constant 0 : index
    %96 = vector.load %arg7[%c0_59, %c0_60, %c0_61] : memref<1x4x1xf32, #tpu.memory_space<vmem>>, vector<1x4x1xf32>
    %97 = vector.shape_cast %96 : vector<1x4x1xf32> to vector<4x1xf32>
    %98 = vector.shape_cast %95 : vector<4x1xf32> to vector<1x4x1xf32>
    tpu.vector_store %arg7[%c0_59, %c0_60, %c0_61], %98 {strides = array<i32>} : memref<1x4x1xf32, #tpu.memory_space<vmem>>, vector<1x4x1xf32>,
    return
  }
  func.func @transform_0(%arg0: i32, %arg1: i32) -> (i32, i32, i32, i32) {
    %c0_i32 = arith.constant 0 : i32
    %c0_i32_0 = arith.constant 0 : i32
    %c0_i32_1 = arith.constant 0 : i32
    return %arg0, %arg1, %c0_i32, %c0_i32_0 : i32, i32, i32, i32
  }
  func.func @transform_1(%arg0: i32, %arg1: i32) -> (i32, i32) {
    %c0_i32 = arith.constant 0 : i32
    %c0_i32_0 = arith.constant 0 : i32
    return %arg1, %c0_i32 : i32, i32
  }
  func.func @transform_2(%arg0: i32, %arg1: i32) -> (i32, i32) {
    %c0_i32 = arith.constant 0 : i32
    %c0_i32_0 = arith.constant 0 : i32
    return %arg1, %c0_i32 : i32, i32
  }
  func.func @transform_3(%arg0: i32, %arg1: i32) -> (i32, i32, i32) {
    %c0_i32 = arith.constant 0 : i32
    %c0_i32_0 = arith.constant 0 : i32
    return %arg0, %arg1, %c0_i32 : i32, i32, i32
  }
  func.func @transform_4(%arg0: i32, %arg1: i32) -> (i32, i32, i32) {
    %c0_i32 = arith.constant 0 : i32
    %c0_i32_0 = arith.constant 0 : i32
    return %arg0, %arg1, %c0_i32 : i32, i32, i32
  }
  func.func @transform_5(%arg0: i32, %arg1: i32) -> (i32, i32, i32) {
    %c0_i32 = arith.constant 0 : i32
    %c0_i32_0 = arith.constant 0 : i32
    return %arg0, %arg1, %c0_i32 : i32, i32, i32
  }
}

module attributes {stable_mosaic.version = 11 : i64} {
  func.func @pointwise_kernel(%arg0: i32, %arg1: i32, %arg2: memref<1x4x256xbf16, #tpu.memory_space<vmem>>, %arg3: memref<8x4xbf16, #tpu.memory_space<vmem>>, %arg4: memref<8x1xf32, #tpu.memory_space<vmem>>, %arg5: memref<1x8x256xf32, #tpu.memory_space<vmem>>) attributes {dimension_semantics = [#tpu.dimension_semantics<parallel>, #tpu.dimension_semantics<parallel>], iteration_bounds = array<i64: 2, 1>, scalar_prefetch = 0 : i64, scratch_operands = 0 : i64, tpu.core_type = #tpu.core_type<tc>, window_params = [{transform_indices = @transform_0, window_bounds = array<i64: 1, 4, 256>}, {pipeline_mode = #tpu.pipeline_mode<synchronous>, transform_indices = @transform_1, window_bounds = array<i64: 8, 4>}, {pipeline_mode = #tpu.pipeline_mode<synchronous>, transform_indices = @transform_2, window_bounds = array<i64: 8, 1>}, {transform_indices = @transform_3, window_bounds = array<i64: 1, 8, 256>}]} {
    %c0 = arith.constant 0 : index
    %c0_0 = arith.constant 0 : index
    %0 = vector.load %arg3[%c0, %c0_0] : memref<8x4xbf16, #tpu.memory_space<vmem>>, vector<8x4xbf16>
    %c0_1 = arith.constant 0 : index
    %c0_2 = arith.constant 0 : index
    %c0_3 = arith.constant 0 : index
    %1 = vector.load %arg2[%c0_1, %c0_2, %c0_3] : memref<1x4x256xbf16, #tpu.memory_space<vmem>>, vector<1x4x256xbf16>
    %2 = vector.shape_cast %1 : vector<1x4x256xbf16> to vector<4x256xbf16>
    %cst = arith.constant dense<0.000000e+00> : vector<8x256xf32>
    %3 = tpu.matmul %0, %2, %cst {dimension_numbers = #tpu.dot_dimension_numbers<[1], [0], [0], [1], [0, 0, 1, 1], [], []>} : vector<8x4xbf16>, vector<4x256xbf16>, vector<8x256xf32> -> vector<8x256xf32>
    %c0_4 = arith.constant 0 : index
    %c0_5 = arith.constant 0 : index
    %4 = vector.load %arg4[%c0_4, %c0_5] : memref<8x1xf32, #tpu.memory_space<vmem>>, vector<8x1xf32>
    %5 = vector.broadcast %4 : vector<8x1xf32> to vector<8x256xf32>
    %6 = arith.addf %3, %5 : vector<8x256xf32>
    %c0_6 = arith.constant 0 : index
    %c0_7 = arith.constant 0 : index
    %c0_8 = arith.constant 0 : index
    %7 = vector.load %arg5[%c0_6, %c0_7, %c0_8] : memref<1x8x256xf32, #tpu.memory_space<vmem>>, vector<1x8x256xf32>
    %8 = vector.shape_cast %7 : vector<1x8x256xf32> to vector<8x256xf32>
    %9 = vector.shape_cast %6 : vector<8x256xf32> to vector<1x8x256xf32>
    tpu.vector_store %arg5[%c0_6, %c0_7, %c0_8], %9 {strides = array<i32>} : memref<1x8x256xf32, #tpu.memory_space<vmem>>, vector<1x8x256xf32>,
    return
  }
  func.func @transform_0(%arg0: i32, %arg1: i32) -> (i32, i32, i32) {
    %c0_i32 = arith.constant 0 : i32
    %c0_i32_0 = arith.constant 0 : i32
    return %arg0, %c0_i32, %arg1 : i32, i32, i32
  }
  func.func @transform_1(%arg0: i32, %arg1: i32) -> (i32, i32) {
    %c0_i32 = arith.constant 0 : i32
    %c0_i32_0 = arith.constant 0 : i32
    %c0_i32_1 = arith.constant 0 : i32
    return %c0_i32, %c0_i32_0 : i32, i32
  }
  func.func @transform_2(%arg0: i32, %arg1: i32) -> (i32, i32) {
    %c0_i32 = arith.constant 0 : i32
    %c0_i32_0 = arith.constant 0 : i32
    %c0_i32_1 = arith.constant 0 : i32
    return %c0_i32, %c0_i32_0 : i32, i32
  }
  func.func @transform_3(%arg0: i32, %arg1: i32) -> (i32, i32, i32) {
    %c0_i32 = arith.constant 0 : i32
    %c0_i32_0 = arith.constant 0 : i32
    return %arg0, %c0_i32, %arg1 : i32, i32, i32
  }
}

</mosaic_0001>

<bundles_post_ra>
// kernel: sep_conv2d.3
= control target key start
LH: loop header
LB: loop body
LE: loop exit
PB: predicated region body
PF: predicated region fallthrough
CT: control target
= control target key end

     0   :  { %s433_s12 = smov 0   ;;  %s435_s13 = smov 0   ;;  %s472_s0 = inlined_call_operand.vmem [shape: bf16[2,4,256], index: 0, kind: input, shape index: {}]   ;;  %s473_s1 = inlined_call_operand.vmem [shape: bf16[8,4], index: 1, kind: input, shape index: {}]   ;;  %s474_s2 = inlined_call_operand.vmem [shape: f32[8,1], index: 2, kind: input, shape index: {}]   ;;  %s475_s3 = inlined_call_operand.vmem [shape: f32[2,8,256], index: 3, kind: output, shape index: {}]  }
   0x1   :  { %s437_s14 = smov 0  }
   0x2 LB: > { %s25_s15 = sadd.s32 1, %s406_s13  ;;  %p351_p0 = scmp.ge.s32.totalorder %s410_s14, 1  ;;  %s410_s14 = sphi %s437_s14, %s13_s14   ;;  %s406_s13 = sphi %s435_s13, %s477_s13   ;;  %s402_s12 = sphi %s433_s12, %s476_s12  }
   0x3   : > { %p27_p1 = scmp.ge.s32.totalorder %s25_s15, 2  ;;  %p158_p2 = scmp.lt.s32.totalorder %s410_s14, 3 }
   0x5   : > { %s479_s15 = smov (%p27_p1, %s25_s15), 0  ;;  %p159_p3 = pnand %p351_p0, %p158_p2 }
   0x6   : > { %p191_p4 = scmp.lt.s32.totalorder (!%p159_p3), %s402_s12, 1 }
   0x7   : > { %162 = sbr.rel (%p159_p3) target bundleno = 162 (0xa2), region = 32 }
   0xc   : > { %v412_v0 = vmov 0   ;;  %v213_v1 = vld [vmem:[%s474_s2] sm:$0xff]  ;;  %s481_s12 = smov (!%p191_p4, %s402_s12), 1  ;;  %vm227_vm0 = vcmask 1041408   ;;  %vm223_vm1 = vcmask 31744  }
   0xd   : > { %387 = vset.pattern.permute.xlu0 %v412_v0  ;;  %s360_s18 = sshll.u32 %s481_s12, 2  ;;  %v211_v7 = vld [vmem:[%s473_s1] sm:$0xf]  ;;  %s361_s24 = sshll.u32 %s481_s12, 4 }
   0xe   : > { %216 = vperm.xlu0 %387, %v213_v1   ;;  %s198_s21 = scalar_lea.vmem %s472_s0, %s360_s18  ;;  %s208_s27 = scalar_lea.vmem %s475_s3, %s361_s24 }
   0xf   : > { %v212_v2 = vld [vmem:[%s198_s21] sm:$0xf] }
  0x10   : > { %220 = vst [vmem:[#allocation1] ss:$4 sm:$0xff] %v212_v2 }
  0x17   : > { %v221_v3 = vld.sshfl [vmem:[#allocation1] sm:$0xff pattern:$0x73625140]  ;;  %v222_v4 = vld.sshfl [vmem:[#allocation1 + $0x8] sm:$0xff pattern:$0x73625140] }
  0x18   : > { %v228_v5 = vsel %vm227_vm0, %v221_v3, 0  ;;  %v230_v6 = vsel %vm227_vm0, %v222_v4, 0 }
  0x19   : > { %239 = vmatpush.bf16.msra.mxu0 %v228_v5  ;;  %252 = vmatpush.bf16.msra.mxu1 %v230_v6 }
  0x1c   : > { %356 = vmatmul.msk.bf16.vlgmr.msra.gmra.mxu0 %vm223_vm1, %v211_v7  ;;  %357 = vmatmul.msk.bf16.vlgmr.msra.gmra.mxu1 %vm223_vm1, %v211_v7 }
  0x80   : > { %v217_v8 = vpop.permute.xlu0 %216 }
  0x99   : > { %v241_v9 = vpop.f32.mrf.mxu0  ;;  %v254_v10 = vpop.f32.mrf.mxu1 }
  0x9a   : > { %v242_v11 = vadd.f32 %v241_v9, %v217_v8  ;;  %v255_v12 = vadd.f32 %v254_v10, %v217_v8 }
  0x9c   : > { %258 = vst [vmem:[%s208_s27] sm:$0xff] %v242_v11 }
  0x9d   : > { %259 = vst [vmem:[%s208_s27 + $0x8] sm:$0xff] %v255_v12 }
  0xa1   : > { %v243_v13 = vpop.f32.mrf.mxu0  ;;  %v256_v14 = vpop.f32.mrf.mxu1 }
  0xa2 PF: > { %s13_s14 = sadd.s32 1, %s410_s14   ;;  %s476_s12 = smov %s406_s13 }
  0xa3   : > { %p10_p5 = scmp.ge.s32.totalorder %s13_s14, 4   ;;  %s477_s13 = smov %s479_s15 }
  0xa5   :  { %12 = sbr.rel (!%p10_p5) target bundleno = 2 (0x2), region = 62 }

// kernel: sep_conv2d.2
= control target key start
LH: loop header
LB: loop body
LE: loop exit
PB: predicated region body
PF: predicated region fallthrough
CT: control target
= control target key end

     0   :  { %11 = vsyncpa [#allocation4], 0  ;;  %s2070_s0 = inlined_call_operand.hbm [shape: f32[2,4,16,16], index: 0, kind: input, shape index: {}]   ;;  %s2071_s1 = inlined_call_operand.vmem [shape: f32[4,9], index: 1, kind: input, shape index: {}]   ;;  %s2072_s2 = inlined_call_operand.vmem [shape: f32[4,1], index: 2, kind: input, shape index: {}]   ;;  %s2073_s3 = inlined_call_operand.vmem [shape: bf16[2,4,256], index: 3, kind: output, shape index: {0}]   ;;  %s2074_s4 = inlined_call_operand.vmem [shape: f32[2,4,1], index: 4, kind: output, shape index: {1}]   ;;  %s2075_s5 = inlined_call_operand.vmem [shape: f32[2,4,1], index: 5, kind: output, shape index: {2}]  }
   0x1   :  { %13 = vsyncpa [#allocation4 + $0x1], 0  ;;  %s1641_s18 = smov 0   ;;  %s1643_s19 = smov 0  }
   0x2   :  { %s1645_s20 = smov 0   ;;  %s1647_s21 = smov 0  }
   0x3   :  { %s1649_s22 = smov 0   ;;  %s1651_s23 = smov 0  }
   0x4 LB: > { %s1381_s24 = sadd.s32 4294967295, %s1585_s23   ;;  %s31_s25 = sadd.s32 1, %s1581_s22  ;;  %s1585_s23 = sphi %s1651_s23, %s19_s23   ;;  %s1581_s22 = sphi %s1649_s22, %s2082_s22   ;;  %s1577_s21 = sphi %s1647_s21, %s2081_s21   ;;  %s1573_s20 = sphi %s1645_s20, %s2080_s20   ;;  %s1569_s19 = sphi %s1643_s19, %s2079_s19   ;;  %s1565_s18 = sphi %s1641_s18, %s2078_s18  }
   0x5   : > { %p33_p0 = scmp.ge.s32.totalorder %s31_s25, 2  ;;  %s40_s26 = sadd.s32 1, %s1573_s20 }
   0x6   : > { %p47_p1 = scmp.ne.s32.totalorder %s1573_s20, %s1569_s19  ;;  %p48_p2 = scmp.eq.s32.totalorder %s1585_s23, 0 }
   0x7   : > { %s2084_s25 = smov (%p33_p0, %s31_s25), 0  ;;  %p53_p4 = scmp.ne.s32.totalorder %s1569_s19, %s1565_s18 }
   0x8   : > { %p1677_p3 = por %p48_p2, %p47_p1  ;;  %s35_s28 = ssub.s32 %s1581_s22, %s2084_s25 }
   0x9   : > { %p54_p5 = scmp.eq.s32.totalorder %s1381_s24, 0  ;;  %p38_p6 = scmp.eq.s32.totalorder %s35_s28, 0 }
   0xa   : > { %p1406_p8 = scmp.lt.s32.totalorder %s1585_s23, 2  ;;  %s227_s6 = sand.u32 1, %s1573_s20  }
   0xb   : > { %p1684_p7 = por %p54_p5, %p53_p4  ;;  %s1398_s7 = sshll.u32 %s1581_s22, 6 }
   0xc   : > { %s1690_s30 = scalar_select %p38_p6, %s1573_s20, %s40_s26  }
   0xd   : > { %s1387_s8 = sshll.u32 %s227_s6, 6  ;;  %s239_s11 = scalar_lea.hbm %s2070_s0, %s1398_s7 }
   0xe   : > { %s240_s12 = sshll.u32 %s239_s11, 4  ;;  %s231_s13 = scalar_lea.vmem [#allocation3], %s1387_s8  ;;  %s241_s12 = int_to_ptr.hbm [resolvable:$true] %s240_s12 }
   0xf   : > { %s242_s14 = sshll.u32 %s231_s13, 4  ;;  %p1403_p9 = pnand %p1406_p8, %p1677_p3  ;;  %s243_s14 = int_to_ptr.vmem [resolvable:$true] %s242_s14 }
  0x10   : > { %p1390_p10 = scmp.ge.s32.totalorder %s1585_s23, 1  ;;  %p250_p11 = scmp.lt.s32.totalorder %s1585_s23, 3 }
  0x11   : > { %s228_s15 = scalar_lea.sflag [#allocation4], %s227_s6  ;;  %s1587_s16 = smov 128  }
  0x12   : > { %s1588_s17 = smov 8   ;;  %p251_p12 = pnand %p1390_p10, %p250_p11 }
  0x13   : > { %1405 = dma.hbm_to_vmem [thread:$0]  (!%p1403_p9), %s241_s12, 1024, %s243_s14, %s228_s15, %s1587_s16, %s1587_s16, %s1588_s17  }
  0x14   : > { %254 = sbr.rel (%p251_p12) target bundleno = 953 (0x3b9), region = 32  ;;  %s256_s18 = sand.u32 (!%p251_p12), 1, %s1569_s19  }
  0x15   : > { %s1391_s24 = sshll.u32 (!%p251_p12), %s256_s18, 6  ;;  %s257_s26 = scalar_lea.sflag (!%p251_p12), [#allocation4], %s256_s18 }
  0x16   : > { %s260_s28 = scalar_lea.vmem (!%p251_p12), [#allocation3], %s1391_s24 }
  0x19   : > { %1560 = dma.done.wait (%p1684_p7), %s257_s26, 1024  }
  0x1a   : > { %1562 = vsyncadd (%p1684_p7), %s257_s26, 4294966272  ;;  %v1589_v0 = vmov 0   ;;  %v1590_v1 = vmov 1   ;;  %v387_v2 = vld [vmem:[%s260_s28 + $0x20] sm:$0xff]  ;;  %v385_v3 = vld [vmem:[%s260_s28 + $0x10] sm:$0xff]  ;;  %s1591_s27 = smov 1  }
  0x1b   : > { %1479 = vset.pattern.permute.xlu2 %v1589_v0  ;;  %1483 = vset.pattern.permute.xlu0 %v1590_v1  ;;  %v383_v4 = vld [vmem:[%s260_s28] sm:$0xff]  ;;  %v388_v5 = vld [vmem:[%s260_s28 + $0x28] sm:$0xff]  ;;  %v386_v6 = vld [vmem:[%s260_s28 + $0x18] sm:$0xff]  ;;  %v1592_v18 = vmov 2   ;;  %v1593_v19 = vmov 3   ;;  %vm346_vm0 = vcmask 139264  }
  0x1c   : > { %1480 = vset.pattern.permute.xlu1 %v1589_v0  ;;  %407 = vrot.lane.b32.xlu2 %v387_v2, %s1591_s27  ;;  %v384_v7 = vld [vmem:[%s260_s28 + $0x8] sm:$0xff]  ;;  %v432_v8 = vld [vmem:[%s2071_s1] sm:$0xf]  ;;  %v390_v10 = vld [vmem:[%s260_s28 + $0x38] sm:$0xff]  ;;  %vm355_vm1 = vcmask 7168   ;;  %v1594_v20 = vmov 0.0  }
  0x1d   : > { %403 = vrot.lane.b32.xlu1 %v385_v3, %s1591_s27  ;;  %399 = vrot.lane.b32.xlu0 %v383_v4, %s1591_s27  ;;  %v1711_v9 = vperm.slane %v432_v8, 0  ;;  %v389_v11 = vld [vmem:[%s260_s28 + $0x30] sm:$0xff]  ;;  %v437_v12 = vrot.slane %v432_v8, 3  ;;  %v436_v13 = vrot.slane %v432_v8, 2  ;;  %v435_v16 = vrot.slane %v432_v8, 1  ;;  %364 = vst.msk [vmem:[#allocation2 + $0x38] sm:$0xff] %vm355_vm1, %v1594_v20 }
  0x1e   : > { %349 = vst.msk [vmem:[#allocation2 + $0x30] sm:$0x1] %vm346_vm0, %v1594_v20  ;;  %vm369_vm2 = vcmask 146568   ;;  %v1595_v21 = vmov 4   ;;  %vm358_vm3 = vcmask 1024   ;;  %vm372_vm4 = vcmask 140424  }
  0x1f   : > { %v1714_v14 = vperm.slane %v437_v12, 0  ;;  %v1716_v15 = vperm.slane %v436_v13, 0  ;;  %v1721_v17 = vperm.slane %v435_v16, 0  ;;  %363 = vst.msk [vmem:[#allocation2 + $0x30] sm:$0xff] %vm355_vm1, %v1594_v20  ;;  %vm423_vm5 = vcmask 138248   ;;  %s1596_s7 = smov 127  }
  0x20   : > { %377 = vst.msk [vmem:[#allocation2 + $0x30] sm:$0xff] %vm369_vm2, %v1594_v20  ;;  %s1597_s8 = smov 126   ;;  %vm947_vm6 = vcmask 1047556   ;;  %s1604_s9 = smov 32   ;;  %vm1115_vm7 = vcmask 130048   ;;  %vm1117_vm8 = vcmask 261120  }
  0x21   : > { %378 = vst.msk [vmem:[#allocation2 + $0x38] sm:$0xff] %vm369_vm2, %v1594_v20  ;;  %s1605_s10 = smov 16   ;;  %s1606_s11 = smov 48   ;;  %vm1119_vm9 = vcmask 392192   ;;  %vm1121_vm10 = vcmask 523264   ;;  %vm1123_vm11 = vcmask 654336  }
  0x22   : > { %347 = vst.msk [vmem:[#allocation2] sm:$0x1] %vm346_vm0, %v1594_v20  ;;  %s1607_s12 = smov 80   ;;  %s1608_s13 = smov 64   ;;  %vm1125_vm12 = vcmask 785408   ;;  %vm1127_vm13 = vcmask 916480  }
  0x23   : > { %348 = vst.msk [vmem:[#allocation2 + $0x18] sm:$0x1] %vm346_vm0, %v1594_v20  ;;  %s1609_s14 = smov 96   ;;  %s1610_s17 = smov 112   ;;  %vm1152_vm14 = vcmask 1043456   ;;  %vm1146_vm15 = vcmask 1041408  }
  0x24   : > { %409 = vrot.lane.b32.xlu2 %v388_v5, %s1591_s27  ;;  %350 = vst.msk [vmem:[#allocation2 + $0x48] sm:$0x1] %vm346_vm0, %v1594_v20  ;;  %p323_p13 = scmp.lt.s32.totalorder %s1577_s21, 1 }
  0x25   : > { %405 = vrot.lane.b32.xlu1 %v386_v6, %s1591_s27  ;;  %401 = vrot.lane.b32.xlu0 %v384_v7, %s1591_s27  ;;  %351 = vst.msk [vmem:[#allocation2 + $0x11] sm:$0x1] %vm346_vm0, %v1594_v20 }
  0x26   : > { %352 = vst.msk [vmem:[#allocation2 + $0x29] sm:$0x1] %vm346_vm0, %v1594_v20  ;;  %s2086_s21 = smov (!%p323_p13, %s1577_s21), 1 }
  0x27   : > { %353 = vst.msk [vmem:[#allocation2 + $0x41] sm:$0x1] %vm346_vm0, %v1594_v20  ;;  %s1399_s18 = sshll.u32 %s2086_s21, 2 }
  0x28   : > { %354 = vst.msk [vmem:[#allocation2 + $0x59] sm:$0x1] %vm346_vm0, %v1594_v20  ;;  %s331_s28 = scalar_lea.vmem %s2073_s3, %s1399_s18  ;;  %s338_s6 = scalar_lea.vmem %s2074_s4, %s1399_s18  ;;  %vm1161_vm0 = vcmask 3072  }
  0x29   : > { %357 = vst.msk [vmem:[#allocation2 + $0x8] sm:$0xff] %vm355_vm1, %v1594_v20 }
  0x2a   : > { %361 = vst.msk [vmem:[#allocation2 + $0x20] sm:$0xff] %vm355_vm1, %v1594_v20 }
  0x2b   : > { %367 = vst.msk [vmem:[#allocation2 + $0x50] sm:$0xff] %vm355_vm1, %v1594_v20 }
  0x2c   : > { %451 = vperm.xlu2 %1479, %v1711_v9   ;;  %365 = vst.msk [vmem:[#allocation2 + $0x40] sm:$0x3] %vm358_vm3, %v1594_v20 }
  0x2d   : > { %413 = vrot.lane.b32.xlu1 %v390_v10, %s1591_s27  ;;  %411 = vrot.lane.b32.xlu0 %v389_v11, %s1591_s27  ;;  %379 = vst.msk [vmem:[#allocation2 + $0x40] sm:$0x3] %vm372_vm4, %v1594_v20 }
  0x2e   : > { %356 = vst.msk [vmem:[#allocation2] sm:$0xff] %vm355_vm1, %v1594_v20 }
  0x2f   : > { %359 = vst.msk [vmem:[#allocation2 + $0x10] sm:$0x3] %vm358_vm3, %v1594_v20 }
  0x30   : > { %360 = vst.msk [vmem:[#allocation2 + $0x18] sm:$0xff] %vm355_vm1, %v1594_v20 }
  0x31   : > { %362 = vst.msk [vmem:[#allocation2 + $0x28] sm:$0x3] %vm358_vm3, %v1594_v20 }
  0x32   : > { %366 = vst.msk [vmem:[#allocation2 + $0x48] sm:$0xff] %vm355_vm1, %v1594_v20 }
  0x33   : > { %368 = vst.msk [vmem:[#allocation2 + $0x58] sm:$0x3] %vm358_vm3, %v1594_v20 }
  0x34   : > { %463 = vperm.xlu2 %1479, %v1714_v14   ;;  %371 = vst.msk [vmem:[#allocation2 + $0x8] sm:$0xff] %vm369_vm2, %v1594_v20 }
  0x35   : > { %459 = vperm.xlu1 %1480, %v1716_v15   ;;  %491 = vperm.xlu0 %1483, %v1716_v15   ;;  %375 = vst.msk [vmem:[#allocation2 + $0x20] sm:$0xff] %vm369_vm2, %v1594_v20 }
  0x36   : > { %381 = vst.msk [vmem:[#allocation2 + $0x50] sm:$0xff] %vm369_vm2, %v1594_v20 }
  0x37   : > { %370 = vst.msk [vmem:[#allocation2] sm:$0xff] %vm369_vm2, %v1594_v20 }
  0x38   : > { %373 = vst.msk [vmem:[#allocation2 + $0x10] sm:$0x3] %vm372_vm4, %v1594_v20 }
  0x39   : > { %374 = vst.msk [vmem:[#allocation2 + $0x18] sm:$0xff] %vm369_vm2, %v1594_v20 }
  0x3a   : > { %376 = vst.msk [vmem:[#allocation2 + $0x28] sm:$0x3] %vm372_vm4, %v1594_v20 }
  0x3b   : > { %380 = vst.msk [vmem:[#allocation2 + $0x48] sm:$0xff] %vm369_vm2, %v1594_v20 }
  0x3c   : > { %1482 = vset.pattern.permute.xlu2 %v1590_v1  ;;  %382 = vst.msk [vmem:[#allocation2 + $0x58] sm:$0x3] %vm372_vm4, %v1594_v20 }
  0x3d   : > { %1481 = vset.pattern.permute.xlu1 %v1590_v1  ;;  %1485 = vset.pattern.permute.xlu0 %v1592_v18  ;;  %v1598_v1 = vmov 5  }
  0x3e   : > { %487 = vperm.xlu2 %1482, %v1721_v17   ;;  %483 = vperm.xlu1 %1481, %v1711_v9  }
  0x3f   : > { %551 = vperm.xlu0 %1485, %v1721_v17  }
  0x46   : > { %1484 = vset.pattern.permute.xlu2 %v1592_v18  ;;  %495 = vperm.xlu1 %1481, %v1714_v14  }
  0x47   : > { %1487 = vset.pattern.permute.xlu0 %v1593_v19  ;;  %547 = vperm.xlu2 %1484, %v1711_v9  }
  0x48   : > { %619 = vperm.xlu0 %1487, %v1711_v9  }
  0x4e   : > { %1486 = vset.pattern.permute.xlu1 %v1592_v18 }
  0x4f   : > { %559 = vperm.xlu2 %1484, %v1714_v14   ;;  %555 = vperm.xlu1 %1486, %v1716_v15  }
  0x50   : > { %1491 = vset.pattern.permute.xlu0 %v1595_v21 }
  0x51   : > { %655 = vperm.xlu0 %1491, %v1721_v17  }
  0x57   : > { %1489 = vset.pattern.permute.xlu2 %v1593_v19  ;;  %1488 = vset.pattern.permute.xlu1 %v1593_v19 }
  0x58   : > { %627 = vperm.xlu2 %1489, %v1716_v15   ;;  %623 = vperm.xlu1 %1488, %v1721_v17  }
  0x59   : > { %1495 = vset.pattern.permute.xlu0 %v1598_v1 }
  0x60   : > { %1490 = vset.pattern.permute.xlu2 %v1595_v21  ;;  %631 = vperm.xlu1 %1488, %v1714_v14  }
  0x61   : > { %651 = vperm.xlu2 %1490, %v1711_v9  }
  0x68   : > { %1492 = vset.pattern.permute.xlu1 %v1595_v21 }
  0x69   : > { %663 = vperm.xlu2 %1490, %v1714_v14   ;;  %659 = vperm.xlu1 %1492, %v1716_v15  }
  0x71   : > { %1494 = vset.pattern.permute.xlu2 %v1598_v1  ;;  %1493 = vset.pattern.permute.xlu1 %v1598_v1 }
  0x76   : > { %v408_v22 = vpop.permute.xlu2 %407 }
  0x77   : > { %428 = vst.msk [vmem:[#allocation2 + $0x31] sm:$0xff] %vm423_vm5, %v408_v22 }
  0x7e   : > { %v410_v23 = vpop.permute.xlu2 %409  ;;  %v442_v40 = vld [vmem:[#allocation2 + $0x30] sm:$0xff] }
  0x7f   : > { %429 = vst.msk [vmem:[#allocation2 + $0x39] sm:$0xff] %vm423_vm5, %v410_v23 }
  0x86   : > { %v452_v24 = vpop.permute.xlu2 %451  ;;  %v443_v41 = vld [vmem:[#allocation2 + $0x38] sm:$0xff] }
  0x87   : > { %v1820_v20 = vld [vmem:[#allocation2 + $0x39] sm:$0xff] }
  0x8e   : > { %v464_v27 = vpop.permute.xlu2 %463 }
  0x8f   : > { %v404_v25 = vpop.permute.xlu1 %403  ;;  %v400_v26 = vpop.permute.xlu0 %399 }
  0x90   : > { %426 = vst.msk [vmem:[#allocation2 + $0x19] sm:$0xff] %vm423_vm5, %v404_v25 }
  0x91   : > { %424 = vst.msk [vmem:[#allocation2 + $0x1] sm:$0xff] %vm423_vm5, %v400_v26 }
  0x97   : > { %v406_v28 = vpop.permute.xlu1 %405  ;;  %v402_v29 = vpop.permute.xlu0 %401  ;;  %v1792_v52 = vld [vmem:[#allocation2 + $0x18] sm:$0xff] }
  0x98   : > { %427 = vst.msk [vmem:[#allocation2 + $0x21] sm:$0xff] %vm423_vm5, %v406_v28  ;;  %v438_v30 = vld [vmem:[#allocation2] sm:$0xff]  ;;  %v488_v32 = vpop.permute.xlu2 %487 }
  0x99   : > { %425 = vst.msk [vmem:[#allocation2 + $0x9] sm:$0xff] %vm423_vm5, %v402_v29  ;;  %v1772_v31 = vmul.f32 %v452_v24, %v438_v30  ;;  %v500_v56 = vmul.f32 %v488_v32, %v1792_v52  ;;  %v1809_v8 = vld [vmem:[#allocation2 + $0x19] sm:$0xff]  ;;  %v1837_v29 = vld [vmem:[#allocation2 + $0x31] sm:$0xff] }
  0x9f   : > { %v1774_v33 = vld [vmem:[#allocation2 + $0x20] sm:$0xff]  ;;  %v414_v34 = vpop.permute.xlu1 %413  ;;  %v412_v36 = vpop.permute.xlu0 %411 }
  0xa0   : > { %v501_v35 = vmul.f32 %v488_v32, %v1774_v33  ;;  %431 = vst.msk [vmem:[#allocation2 + $0x51] sm:$0xff] %vm423_vm5, %v414_v34  ;;  %v439_v37 = vld [vmem:[#allocation2 + $0x8] sm:$0xff]  ;;  %v1599_v34 = vmov 8  }
  0xa1   : > { %430 = vst.msk [vmem:[#allocation2 + $0x49] sm:$0xff] %vm423_vm5, %v412_v36  ;;  %v1779_v38 = vmul.f32 %v452_v24, %v439_v37  ;;  %v548_v58 = vpop.permute.xlu2 %547  ;;  %v1826_v24 = vld [vmem:[#allocation2 + $0x1] sm:$0xff]  ;;  %v1828_v25 = vld [vmem:[#allocation2 + $0x9] sm:$0xff] }
  0xa2   : > { %520 = vrot.lane.b32.xlu0 %v501_v35, %s1596_s7  ;;  %v562_v2 = vmul.f32 %v548_v58, %v438_v30  ;;  %v563_v4 = vmul.f32 %v548_v58, %v439_v37  ;;  %v1835_v28 = vld [vmem:[#allocation2 + $0x21] sm:$0xff] }
  0xa7   : > { %v460_v39 = vpop.permute.xlu1 %459  ;;  %v492_v48 = vpop.permute.xlu0 %491 }
  0xa8   : > { %v1782_v42 = vmul.f32 %v460_v39, %v442_v40  ;;  %v1784_v43 = vmul.f32 %v460_v39, %v443_v41  ;;  %v444_v44 = vld [vmem:[#allocation2 + $0x48] sm:$0xff]  ;;  %v445_v45 = vld [vmem:[#allocation2 + $0x50] sm:$0xff]  ;;  %v502_v54 = vmul.f32 %v492_v48, %v442_v40  ;;  %v503_v62 = vmul.f32 %v492_v48, %v443_v41 }
  0xa9   : > { %v1786_v46 = vmul.f32 %v464_v27, %v444_v44  ;;  %v1788_v47 = vmul.f32 %v464_v27, %v445_v45  ;;  %v560_v5 = vpop.permute.xlu2 %559  ;;  %v1845_v36 = vld [vmem:[#allocation2 + $0x49] sm:$0xff]  ;;  %v1600_v39 = vmov 7   ;;  %v617_v48 = vld [vmem:[#allocation2 + $0x51] sm:$0xff] }
  0xaa   : > { %v568_v18 = vmul.f32 %v560_v5, %v444_v44  ;;  %v569_v19 = vmul.f32 %v560_v5, %v445_v45 }
  0xb0   : > { %v484_v49 = vpop.permute.xlu1 %483 }
  0xb1   : > { %v498_v50 = vmul.f32 %v484_v49, %v438_v30  ;;  %v499_v51 = vmul.f32 %v484_v49, %v439_v37  ;;  %v552_v57 = vpop.permute.xlu0 %551 }
  0xb2   : > { %v564_v59 = vmul.f32 %v552_v57, %v1792_v52  ;;  %v565_v10 = vmul.f32 %v552_v57, %v1774_v33  ;;  %v1817_v16 = vpop.permute.xlu2 %627 }
  0xb3   : > { %516 = vrot.lane.b32.xlu1 %v499_v51, %s1596_s7  ;;  %514 = vrot.lane.b32.xlu2 %v498_v50, %s1596_s7  ;;  %v638_v1 = vmul.f32 %v1817_v16, %v1837_v29 }
  0xb8   : > { %v496_v53 = vpop.permute.xlu1 %495 }
  0xb9   : > { %v504_v55 = vmul.f32 %v496_v53, %v444_v44  ;;  %v505_v60 = vmul.f32 %v496_v53, %v445_v45 }
  0xba   : > { %v1801_v63 = vpop.permute.xlu0 %619 }
  0xbb   : > { %526 = vrot.lane.b32.xlu0 %v504_v55, %s1596_s7  ;;  %522 = vrot.lane.b32.xlu1 %v502_v54, %s1596_s7  ;;  %v652_v23 = vpop.permute.xlu2 %651 }
  0xbc   : > { %518 = vrot.lane.b32.xlu2 %v500_v56, %s1596_s7  ;;  %v666_v26 = vmul.f32 %v652_v23, %v1826_v24  ;;  %v667_v27 = vmul.f32 %v652_v23, %v1828_v25  ;;  %v635_v56 = vmul.f32 %v1801_v63, %v1828_v25 }
  0xc1   : > { %v556_v61 = vpop.permute.xlu1 %555 }
  0xc2   : > { %v567_v3 = vmul.f32 %v556_v61, %v443_v41  ;;  %v566_v12 = vmul.f32 %v556_v61, %v442_v40  ;;  %v1601_v40 = vmov 6  }
  0xc3   : > { %582 = vrot.lane.b32.xlu0 %v564_v59, %s1597_s8  ;;  %528 = vrot.lane.b32.xlu1 %v505_v60, %s1596_s7  ;;  %v656_v7 = vpop.permute.xlu0 %655  ;;  %v664_v35 = vpop.permute.xlu2 %663 }
  0xc4   : > { %524 = vrot.lane.b32.xlu2 %v503_v62, %s1596_s7  ;;  %v668_v11 = vmul.f32 %v656_v7, %v1809_v8  ;;  %v669_v30 = vmul.f32 %v656_v7, %v1835_v28  ;;  %v672_v37 = vmul.f32 %v664_v35, %v1845_v36  ;;  %v673_v49 = vmul.f32 %v664_v35, %v617_v48 }
  0xca   : > { %v1804_v6 = vpop.permute.xlu1 %623 }
  0xcb   : > { %588 = vrot.lane.b32.xlu0 %v567_v3, %s1597_s8  ;;  %578 = vrot.lane.b32.xlu1 %v562_v2, %s1597_s8 }
  0xcc   : > { %580 = vrot.lane.b32.xlu2 %v563_v4, %s1597_s8 }
  0xd2   : > { %v1813_v13 = vpop.permute.xlu1 %631 }
  0xd3   : > { %686 = vrot.lane.b32.xlu0 %v668_v11, %s1596_s7  ;;  %584 = vrot.lane.b32.xlu1 %v565_v10, %s1597_s8  ;;  %v641_v7 = vmul.f32 %v1813_v13, %v617_v48 }
  0xd4   : > { %586 = vrot.lane.b32.xlu2 %v566_v12, %s1597_s8 }
  0xdb   : > { %v660_v21 = vpop.permute.xlu1 %659  ;;  %590 = vrot.lane.b32.xlu1 %v568_v18, %s1597_s8  ;;  %v634_v18 = vmul.f32 %v1801_v63, %v1826_v24 }
  0xdc   : > { %v671_v22 = vmul.f32 %v660_v21, %v1820_v20  ;;  %592 = vrot.lane.b32.xlu2 %v569_v19, %s1597_s8  ;;  %v670_v32 = vmul.f32 %v660_v21, %v1837_v29 }
  0xde   : > { %692 = vrot.lane.b32.xlu0 %v671_v22, %s1596_s7 }
  0xe3   : > { %682 = vrot.lane.b32.xlu1 %v666_v26, %s1596_s7 }
  0xe4   : > { %684 = vrot.lane.b32.xlu2 %v667_v27, %s1596_s7 }
  0xe6   : > { %723 = vperm.xlu0 %1495, %v1716_v15  }
  0xeb   : > { %688 = vrot.lane.b32.xlu1 %v669_v30, %s1596_s7 }
  0xec   : > { %690 = vrot.lane.b32.xlu2 %v670_v32, %s1596_s7 }
  0xee   : > { %1498 = vset.pattern.permute.xlu0 %v1599_v34 }
  0xef   : > { %895 = vperm.xlu0 %1498, %v1714_v14  }
  0xf3   : > { %727 = vperm.xlu1 %1493, %v1714_v14  }
  0xf4   : > { %719 = vperm.xlu2 %1494, %v1721_v17  }
  0xf7   : > { %694 = vrot.lane.b32.xlu0 %v672_v37, %s1596_s7 }
  0xf8   : > { %1502 = vset.pattern.permute.xlu0 %v1601_v40 }
  0xfb   : > { %715 = vperm.xlu1 %1493, %v1711_v9  }
  0xfc   : > { %1496 = vset.pattern.permute.xlu2 %v1600_v39 }
  0xfd   : > { %831 = vperm.xlu2 %1496, %v1714_v14  }
 0x103   : > { %1497 = vset.pattern.permute.xlu1 %v1600_v39 }
 0x104   : > { %823 = vperm.xlu1 %1497, %v1721_v17  }
 0x105   : > { %827 = vperm.xlu2 %1496, %v1716_v15  }
 0x10c   : > { %819 = vperm.xlu1 %1497, %v1711_v9  }
 0x10d   : > { %1499 = vset.pattern.permute.xlu2 %v1599_v34  ;;  %v515_v41 = vpop.permute.xlu2 %514 }
 0x10e   : > { %887 = vperm.xlu2 %1499, %v1721_v17   ;;  %v538_v44 = vadd.f32 %v515_v41, %v1772_v31 }
 0x114   : > { %1500 = vset.pattern.permute.xlu1 %v1599_v34  ;;  %v1863_v53 = vpop.permute.xlu0 %520 }
 0x115   : > { %891 = vperm.xlu1 %1500, %v1716_v15  }
 0x116   : > { %883 = vperm.xlu2 %1499, %v1711_v9   ;;  %v1859_v45 = vpop.permute.xlu2 %518 }
 0x11d   : > { %696 = vrot.lane.b32.xlu1 %v673_v49, %s1596_s7 }
 0x11e   : > { %v525_v50 = vpop.permute.xlu2 %524  ;;  %1501 = vset.pattern.permute.xlu1 %v1601_v40  ;;  %1504 = vset.pattern.permute.xlu2 %v1601_v40 }
 0x11f   : > { %v543_v51 = vadd.f32 %v525_v50, %v1784_v43 }
 0x125   : > { %v517_v54 = vpop.permute.xlu1 %516  ;;  %799 = vperm.xlu1 %1501, %v1714_v14  }
 0x126   : > { %v539_v31 = vadd.f32 %v517_v54, %v1779_v38  ;;  %v581_v55 = vpop.permute.xlu2 %580 }
 0x128   : > { %v603_v57 = vadd.f32 %v581_v55, %v539_v31 }
 0x12a   : > { %v643_v58 = vadd.f32 %v635_v56, %v603_v57 }
 0x12d   : > { %v527_v59 = vpop.permute.xlu0 %526  ;;  %v523_v60 = vpop.permute.xlu1 %522 }
 0x12e   : > { %v544_v61 = vadd.f32 %v527_v59, %v1786_v46  ;;  %v542_v62 = vadd.f32 %v523_v60, %v1782_v42  ;;  %v587_v43 = vpop.permute.xlu2 %586  ;;  %v639_v42 = vmul.f32 %v1817_v16, %v1820_v20  ;;  %v640_v16 = vmul.f32 %v1813_v13, %v1845_v36 }
 0x130   : > { %v606_v2 = vadd.f32 %v587_v43, %v542_v62  ;;  %v1920_v43 = vld [vmem:[#allocation2 + $0x32] sm:$0xff] }
 0x132   : > { %v646_v14 = vadd.f32 %v638_v1, %v606_v2 }
 0x135   : > { %v1873_v3 = vpop.permute.xlu0 %582  ;;  %v529_v38 = vpop.permute.xlu1 %528 }
 0x136   : > { %v545_v4 = vadd.f32 %v529_v38, %v1788_v47  ;;  %v593_v5 = vpop.permute.xlu2 %592 }
 0x138   : > { %v609_v10 = vadd.f32 %v593_v5, %v545_v4 }
 0x13a   : > { %v1877_v11 = vadd.f32 %v641_v7, %v609_v10  ;;  %v1932_v7 = vld [vmem:[#allocation2 + $0x1a] sm:$0xff] }
 0x13d   : > { %v589_v46 = vpop.permute.xlu0 %588  ;;  %v579_v12 = vpop.permute.xlu1 %578 }
 0x13e   : > { %v607_v19 = vadd.f32 %v589_v46, %v543_v51  ;;  %v602_v21 = vadd.f32 %v579_v12, %v538_v44  ;;  %v685_v22 = vpop.permute.xlu2 %684  ;;  %v1942_v12 = vld [vmem:[#allocation2 + $0x3a] sm:$0xff] }
 0x13f   : > { %v1883_v23 = vadd.f32 %v685_v22, %v643_v58  ;;  %v1951_v22 = vld [vmem:[#allocation2 + $0xa] sm:$0xff] }
 0x140   : > { %v647_v47 = vadd.f32 %v639_v42, %v607_v19  ;;  %v642_v26 = vadd.f32 %v634_v18, %v602_v21  ;;  %v1949_v21 = vld [vmem:[#allocation2 + $0x2] sm:$0xff] }
 0x145   : > { %v1885_v27 = vpop.permute.xlu1 %584  ;;  %v1889_v34 = vpop.permute.xlu0 %686 }
 0x146   : > { %v691_v30 = vpop.permute.xlu2 %690 }
 0x147   : > { %v1887_v32 = vadd.f32 %v691_v30, %v646_v14 }
 0x14d   : > { %v591_v35 = vpop.permute.xlu1 %590 }
 0x14e   : > { %v608_v37 = vadd.f32 %v591_v35, %v544_v61  ;;  %v720_v56 = vpop.permute.xlu2 %719 }
 0x14f   : > { %v733_v59 = vmul.f32 %v720_v56, %v1835_v28  ;;  %v732_v61 = vmul.f32 %v720_v56, %v1809_v8 }
 0x150   : > { %v693_v63 = vpop.permute.xlu0 %692  ;;  %v648_v39 = vadd.f32 %v640_v16, %v608_v37 }
 0x151   : > { %v1893_v40 = vadd.f32 %v693_v63, %v647_v47 }
 0x155   : > { %v683_v41 = vpop.permute.xlu1 %682 }
 0x156   : > { %v1895_v44 = vadd.f32 %v683_v41, %v642_v26 }
 0x158   : > { %v724_v49 = vpop.permute.xlu0 %723 }
 0x159   : > { %v734_v50 = vmul.f32 %v724_v49, %v1837_v29  ;;  %v735_v62 = vmul.f32 %v724_v49, %v1820_v20  ;;  %v784_v20 = vld [vmem:[#allocation2 + $0x4a] sm:$0xff] }
 0x15b   : > { %754 = vrot.lane.b32.xlu1 %v734_v50, %s1597_s8 }
 0x15d   : > { %v1899_v51 = vpop.permute.xlu1 %688 }
 0x161   : > { %v896_v54 = vpop.permute.xlu0 %895 }
 0x162   : > { %v904_v19 = vmul.f32 %v896_v54, %v784_v20 }
 0x163   : > { %795 = vperm.xlu1 %1501, %v1716_v15   ;;  %v832_v15 = vpop.permute.xlu2 %831 }
 0x164   : > { %v840_v4 = vmul.f32 %v832_v15, %v784_v20 }
 0x165   : > { %v728_v31 = vpop.permute.xlu1 %727 }
 0x166   : > { %v736_v13 = vmul.f32 %v728_v31, %v1845_v36  ;;  %v737_v55 = vmul.f32 %v728_v31, %v617_v48  ;;  %v1913_v36 = vld [vmem:[#allocation2 + $0x52] sm:$0xff] }
 0x167   : > { %v841_v48 = vmul.f32 %v832_v15, %v1913_v36  ;;  %v905_v38 = vmul.f32 %v896_v54, %v1913_v36 }
 0x168   : > { %760 = vrot.lane.b32.xlu0 %v737_v55, %s1597_s8  ;;  %758 = vrot.lane.b32.xlu2 %v736_v13, %s1597_s8 }
 0x169   : > { %v695_v57 = vpop.permute.xlu0 %694 }
 0x16a   : > { %v1905_v58 = vadd.f32 %v695_v57, %v648_v39 }
 0x16d   : > { %v716_v29 = vpop.permute.xlu1 %715 }
 0x16e   : > { %v731_v60 = vmul.f32 %v716_v29, %v1828_v25  ;;  %v828_v25 = vpop.permute.xlu2 %827  ;;  %v730_v2 = vmul.f32 %v716_v29, %v1826_v24 }
 0x16f   : > { %v838_v1 = vmul.f32 %v828_v25, %v1920_v43  ;;  %v839_v18 = vmul.f32 %v828_v25, %v1942_v12 }
 0x170   : > { %748 = vrot.lane.b32.xlu1 %v731_v60, %s1597_s8  ;;  %752 = vrot.lane.b32.xlu0 %v733_v59, %s1597_s8 }
 0x171   : > { %750 = vrot.lane.b32.xlu2 %v732_v61, %s1597_s8 }
 0x176   : > { %v824_v14 = vpop.permute.xlu1 %823  ;;  %v888_v24 = vpop.permute.xlu2 %887 }
 0x177   : > { %v900_v10 = vmul.f32 %v888_v24, %v1932_v7 }
 0x178   : > { %791 = vperm.xlu0 %1502, %v1721_v17   ;;  %864 = vrot.lane.b32.xlu1 %v841_v48, %s1596_s7 }
 0x179   : > { %756 = vrot.lane.b32.xlu2 %v735_v62, %s1597_s8 }
 0x17e   : > { %v820_v5 = vpop.permute.xlu1 %819  ;;  %v884_v16 = vpop.permute.xlu2 %883 }
 0x17f   : > { %v834_v47 = vmul.f32 %v820_v5, %v1949_v21  ;;  %v835_v26 = vmul.f32 %v820_v5, %v1951_v22  ;;  %v898_v37 = vmul.f32 %v884_v16, %v1949_v21  ;;  %v899_v63 = vmul.f32 %v884_v16, %v1951_v22 }
 0x180   : > { %1503 = vset.pattern.permute.xlu0 %v1589_v0  ;;  %858 = vrot.lane.b32.xlu1 %v838_v1, %s1596_s7  ;;  %v1934_v0 = vld [vmem:[#allocation2 + $0x22] sm:$0xff] }
 0x181   : > { %746 = vrot.lane.b32.xlu2 %v730_v2, %s1597_s8  ;;  %455 = vperm.xlu0 %1503, %v1721_v17   ;;  %v836_v17 = vmul.f32 %v824_v14, %v1932_v7  ;;  %v837_v46 = vmul.f32 %v824_v14, %v1934_v0  ;;  %v901_v30 = vmul.f32 %v888_v24, %v1934_v0 }
 0x188   : > { %928 = vrot.lane.b32.xlu1 %v905_v38, %s1597_s8 }
 0x189   : > { %787 = vperm.xlu2 %1504, %v1711_v9   ;;  %862 = vrot.lane.b32.xlu0 %v840_v4, %s1596_s7  ;;  %v892_v9 = vpop.permute.xlu1 %891 }
 0x18a   : > { %v903_v42 = vmul.f32 %v892_v9, %v1942_v12  ;;  %v902_v35 = vmul.f32 %v892_v9, %v1920_v43 }
 0x190   : > { %918 = vrot.lane.b32.xlu1 %v900_v10, %s1597_s8  ;;  %v636_v10 = vmul.f32 %v1804_v6, %v1809_v8 }
 0x191   : > { %854 = vrot.lane.b32.xlu2 %v836_v17, %s1596_s7  ;;  %856 = vrot.lane.b32.xlu0 %v837_v46, %s1596_s7  ;;  %v697_v39 = vpop.permute.xlu1 %696  ;;  %v637_v17 = vmul.f32 %v1804_v6, %v1835_v28 }
 0x192   : > { %v713_v57 = vadd.f32 %v697_v39, %v1877_v11 }
 0x198   : > { %924 = vrot.lane.b32.xlu1 %v903_v42, %s1597_s8 }
 0x199   : > { %860 = vrot.lane.b32.xlu2 %v839_v18, %s1596_s7  ;;  %926 = vrot.lane.b32.xlu0 %v904_v19, %s1597_s8  ;;  %v800_v41 = vpop.permute.xlu1 %799 }
 0x19a   : > { %v808_v50 = vmul.f32 %v800_v41, %v784_v20  ;;  %v809_v60 = vmul.f32 %v800_v41, %v1913_v36 }
 0x1a1   : > { %850 = vrot.lane.b32.xlu2 %v834_v47, %s1596_s7  ;;  %852 = vrot.lane.b32.xlu0 %v835_v26, %s1596_s7 }
 0x1a9   : > { %920 = vrot.lane.b32.xlu2 %v901_v30, %s1597_s8  ;;  %922 = vrot.lane.b32.xlu0 %v902_v35, %s1597_s8 }
 0x1b1   : > { %914 = vrot.lane.b32.xlu2 %v898_v37, %s1597_s8  ;;  %916 = vrot.lane.b32.xlu0 %v899_v63, %s1597_s8  ;;  %s345_s8 = scalar_lea.vmem %s2075_s5, %s1399_s18 }
 0x1c2   : > { %v759_v49 = vpop.permute.xlu2 %758 }
 0x1c3   : > { %v776_v54 = vadd.f32 %v759_v49, %v1905_v58 }
 0x1c5   : > { %v816_v31 = vadd.f32 %v808_v50, %v776_v54 }
 0x1cb   : > { %v751_v13 = vpop.permute.xlu2 %750 }
 0x1cd   : > { %v1966_v55 = vpop.permute.xlu1 %754 }
 0x1d3   : > { %v1968_v56 = vpop.permute.xlu2 %756 }
 0x1d5   : > { %v1971_v29 = vpop.permute.xlu1 %795 }
 0x1da   : > { %v761_v59 = vpop.permute.xlu0 %760 }
 0x1db   : > { %v777_v61 = vadd.f32 %v761_v59, %v713_v57  ;;  %v747_v15 = vpop.permute.xlu2 %746 }
 0x1dd   : > { %v817_v48 = vadd.f32 %v809_v60, %v777_v61 }
 0x1e2   : > { %v1974_v62 = vpop.permute.xlu1 %748  ;;  %v753_v25 = vpop.permute.xlu0 %752 }
 0x1e3   : > { %v1976_v58 = vpop.permute.xlu2 %787 }
 0x1e4   : > { %v802_v61 = vmul.f32 %v1976_v58, %v1949_v21 }
 0x1ea   : > { %v792_v1 = vpop.permute.xlu0 %791  ;;  %v865_v2 = vpop.permute.xlu1 %864 }
 0x1eb   : > { %v855_v14 = vpop.permute.xlu2 %854  ;;  %v805_v30 = vmul.f32 %v792_v1, %v1934_v0  ;;  %v881_v6 = vadd.f32 %v865_v2, %v817_v48  ;;  %v806_v2 = vmul.f32 %v1971_v29, %v1920_v43 }
 0x1f2   : > { %v859_v20 = vpop.permute.xlu1 %858 }
 0x1f3   : > { %v1978_v38 = vpop.permute.xlu2 %860  ;;  %v456_v11 = vpop.permute.xlu0 %455 }
 0x1f4   : > { %v468_v4 = vmul.f32 %v456_v11, %v1792_v52  ;;  %v469_v5 = vmul.f32 %v456_v11, %v1774_v33 }
 0x1f6   : > { %v540_v36 = vadd.f32 %v1859_v45, %v468_v4  ;;  %v541_v24 = vadd.f32 %v1863_v53, %v469_v5  ;;  %v804_v53 = vmul.f32 %v792_v1, %v1932_v7  ;;  %v774_v5 = vadd.f32 %v1966_v55, %v1887_v32 }
 0x1f7   : > { %v803_v32 = vmul.f32 %v1976_v58, %v1951_v22 }
 0x1f8   : > { %v604_v46 = vadd.f32 %v1873_v3, %v540_v36  ;;  %v605_v9 = vadd.f32 %v1885_v27, %v541_v24  ;;  %v807_v24 = vmul.f32 %v1971_v29, %v1942_v12  ;;  %v814_v21 = vadd.f32 %v806_v2, %v774_v5 }
 0x1fa   : > { %v644_v42 = vadd.f32 %v636_v10, %v604_v46  ;;  %v645_v18 = vadd.f32 %v637_v17, %v605_v9  ;;  %v929_v19 = vpop.permute.xlu1 %928  ;;  %v878_v17 = vadd.f32 %v859_v20, %v814_v21 }
 0x1fb   : > { %v851_v52 = vpop.permute.xlu2 %850  ;;  %v863_v47 = vpop.permute.xlu0 %862  ;;  %v945_v3 = vadd.f32 %v929_v19, %v881_v6 }
 0x1fc   : > { %v708_v33 = vadd.f32 %v1889_v34, %v644_v42  ;;  %v709_v45 = vadd.f32 %v1899_v51, %v645_v18  ;;  %v880_v50 = vadd.f32 %v863_v47, %v816_v31  ;;  %v771_v42 = vadd.f32 %v1974_v62, %v1883_v23 }
 0x1fd   : > { %v1015_v41 = vrot.slane %v945_v3, 4 }
 0x1fe   : > { %v772_v26 = vadd.f32 %v751_v13, %v708_v33  ;;  %v773_v8 = vadd.f32 %v753_v25, %v709_v45  ;;  %v770_v25 = vadd.f32 %v747_v15, %v1895_v44  ;;  %v775_v44 = vadd.f32 %v1968_v56, %v1893_v40 }
 0x1ff   : > { %v811_v33 = vadd.f32 %v803_v32, %v771_v42  ;;  %v433_v42 = vld [vmem:[%s2072_s2] sm:$0xf] }
 0x200   : > { %v812_v28 = vadd.f32 %v804_v53, %v772_v26  ;;  %v813_v35 = vadd.f32 %v805_v30, %v773_v8  ;;  %v810_v31 = vadd.f32 %v802_v61, %v770_v25  ;;  %v815_v46 = vadd.f32 %v807_v24, %v775_v44 }
 0x201   : > { %v1603_v53 = vmov 1934713408  }
 0x202   : > { %v876_v16 = vadd.f32 %v855_v14, %v812_v28  ;;  %v919_v63 = vpop.permute.xlu1 %918  ;;  %v1602_v14 = vmov 1983009808   ;;  %v874_v36 = vadd.f32 %v851_v52, %v810_v31  ;;  %v879_v29 = vadd.f32 %v1978_v38, %v815_v46 }
 0x203   : > { %v857_v27 = vpop.permute.xlu0 %856  ;;  %v921_v39 = vpop.permute.xlu2 %920  ;;  %v952_v11 = vunpack.c.l.s4 %v1602_v14  ;;  %v976_v23 = vunpack.c.l.s4 %v1603_v53 }
 0x204   : > { %v877_v37 = vadd.f32 %v857_v27, %v813_v35  ;;  %v940_v49 = vadd.f32 %v919_v63, %v876_v16 }
 0x205   : > { %v953_v15 = vunpack.c.0.s8 %v952_v11  ;;  %v977_v16 = vunpack.c.0.s8 %v976_v23 }
 0x206   : > { %v941_v34 = vadd.f32 %v921_v39, %v877_v37  ;;  %v961_v13 = vrot.slane %v940_v49, 4 }
 0x208   : > { %v1016_v51 = vsel %vm947_vm6, %v1015_v41, %v941_v34  ;;  %v1017_v7 = vrot.slane %v941_v34, 4 }
 0x209   : > { %v1022_v30 = vperm.slane %v1016_v51, %v953_v15 }
 0x20a   : > { %v1018_v54 = vsel %vm947_vm6, %v945_v3, %v1017_v7  ;;  %v925_v19 = vpop.permute.xlu1 %924 }
 0x20b   : > { %v927_v0 = vpop.permute.xlu0 %926  ;;  %v915_v4 = vpop.permute.xlu2 %914  ;;  %v943_v47 = vadd.f32 %v925_v19, %v879_v29  ;;  %v1026_v37 = vperm.slane %v1018_v54, %v953_v15 }
 0x20c   : > { %v944_v57 = vadd.f32 %v927_v0, %v880_v50  ;;  %v938_v10 = vadd.f32 %v915_v4, %v874_v36 }
 0x20d   : > { %v1003_v35 = vrot.slane %v943_v47, 4 }
 0x20e   : > { %v959_v59 = vrot.slane %v944_v57, 4  ;;  %v962_v60 = vsel %vm947_vm6, %v944_v57, %v961_v13  ;;  %v949_v55 = vrot.slane %v938_v10, 4  ;;  %v1039_v57 = vrot.slane %v1026_v37, 4 }
 0x20f   : > { %v970_v43 = vperm.slane %v962_v60, %v953_v15 }
 0x210   : > { %v960_v48 = vsel %vm947_vm6, %v959_v59, %v940_v49  ;;  %v1027_v49 = vrot.slane %v1022_v30, 4 }
 0x211   : > { %v966_v12 = vperm.slane %v960_v48, %v953_v15  ;;  %v983_v56 = vrot.slane %v970_v43, 4 }
 0x213   : > { %v853_v1 = vpop.permute.xlu0 %852  ;;  %v971_v62 = vrot.slane %v966_v12, 4 }
 0x214   : > { %v875_v8 = vadd.f32 %v853_v1, %v811_v33 }
 0x21b   : > { %v923_v9 = vpop.permute.xlu0 %922 }
 0x21c   : > { %v942_v18 = vadd.f32 %v923_v9, %v878_v17 }
 0x21e   : > { %v946_v52 = vrot.slane %v942_v18, 4  ;;  %v950_v40 = vsel %vm947_vm6, %v942_v18, %v949_v55 }
 0x21f   : > { %v958_v20 = vperm.slane %v950_v40, %v953_v15 }
 0x220   : > { %v948_v45 = vsel %vm947_vm6, %v946_v52, %v938_v10 }
 0x221   : > { %v954_v26 = vperm.slane %v948_v45, %v953_v15  ;;  %v985_v22 = vrot.slane %v958_v20, 4  ;;  %v984_v58 = vsel %vm947_vm6, %v983_v56, %v958_v20 }
 0x222   : > { %v990_v4 = vperm.slane %v984_v58, %v977_v16 }
 0x223   : > { %v917_v6 = vpop.permute.xlu0 %916  ;;  %v973_v38 = vrot.slane %v954_v26, 4  ;;  %v972_v28 = vsel %vm947_vm6, %v971_v62, %v954_v26  ;;  %v986_v3 = vsel %vm947_vm6, %v970_v43, %v985_v22 }
 0x224   : > { %v939_v27 = vadd.f32 %v917_v6, %v875_v8  ;;  %v978_v1 = vperm.slane %v972_v28, %v977_v16  ;;  %v999_v24 = vrot.slane %v990_v4, 4  ;;  %v994_v9 = vperm.slane %v986_v3, %v977_v16 }
 0x225   : > { %v974_v63 = vsel %vm947_vm6, %v966_v12, %v973_v38 }
 0x226   : > { %v1004_v39 = vsel %vm947_vm6, %v1003_v35, %v939_v27  ;;  %v1005_v41 = vrot.slane %v939_v27, 4  ;;  %v982_v34 = vperm.slane %v974_v63, %v977_v16  ;;  %v995_v5 = vrot.slane %v978_v1, 4 }
 0x227   : > { %v1010_v7 = vperm.slane %v1004_v39, %v953_v15  ;;  %v1000_v44 = vsel %vm947_vm6, 0.0, %v999_v24  ;;  %v1001_v32 = vrot.slane %v994_v9, 4 }
 0x228   : > { %v1006_v51 = vsel %vm947_vm6, %v943_v47, %v1005_v41  ;;  %1064 = vrot.lane.b32.xlu0 %v982_v34, %s1604_s9  ;;  %v997_v36 = vrot.slane %v982_v34, 4  ;;  %v996_v21 = vsel %vm947_vm6, 0.0, %v995_v5 }
 0x229   : > { %v1014_v50 = vperm.slane %v1006_v51, %v953_v15  ;;  %v1029_v0 = vrot.slane %v1010_v7, 4  ;;  %v1028_v13 = vsel %vm947_vm6, %v1027_v49, %v1010_v7  ;;  %v1002_v18 = vsel %vm947_vm6, 0.0, %v1001_v32 }
 0x22a   : > { %v1034_v59 = vperm.slane %v1028_v13, %v977_v16  ;;  %v998_v10 = vsel %vm947_vm6, 0.0, %v997_v36 }
 0x22b   : > { %v1030_v54 = vsel %vm947_vm6, %v1022_v30, %v1029_v0  ;;  %v1040_v60 = vsel %vm947_vm6, %v1039_v57, %v1014_v50  ;;  %v1041_v61 = vrot.slane %v1014_v50, 4 }
 0x22c   : > { %v1038_v48 = vperm.slane %v1030_v54, %v977_v16  ;;  %v1051_v25 = vrot.slane %v1034_v59, 4  ;;  %v1046_v15 = vperm.slane %v1040_v60, %v977_v16 }
 0x22d   : > { %v1042_v2 = vsel %vm947_vm6, %v1026_v37, %v1041_v61 }
 0x22e   : > { %1092 = vrot.lane.b32.xlu1 %v1038_v48, %s1604_s9  ;;  %v1052_v31 = vsel %vm947_vm6, 0.0, %v1051_v25  ;;  %v1053_v14 = vrot.slane %v1038_v48, 4  ;;  %v1050_v17 = vperm.slane %v1042_v2, %v977_v16  ;;  %v1055_v46 = vrot.slane %v1046_v15, 4 }
 0x22f   : > { %1088 = vrot.lane.b32.xlu2 %v1052_v31, %s1605_s10 }
 0x230   : > { %v1054_v11 = vsel %vm947_vm6, 0.0, %v1053_v14  ;;  %v1056_v43 = vsel %vm947_vm6, 0.0, %v1055_v46  ;;  %v1057_v55 = vrot.slane %v1050_v17, 4 }
 0x231   : > { %1096 = vrot.lane.b32.xlu0 %v1054_v11, %s1606_s11 }
 0x232   : > { %v1058_v19 = vsel %vm947_vm6, 0.0, %v1057_v55 }
 0x236   : > { %1060 = vrot.lane.b32.xlu1 %v996_v21, %s1605_s10 }
 0x237   : > { %1068 = vrot.lane.b32.xlu2 %v998_v10, %s1606_s11 }
 0x239   : > { %1076 = vrot.lane.b32.xlu0 %v1000_v44, %s1607_s12 }
 0x23e   : > { %1072 = vrot.lane.b32.xlu1 %v990_v4, %s1608_s13 }
 0x23f   : > { %1100 = vrot.lane.b32.xlu2 %v1046_v15, %s1608_s13 }
 0x241   : > { %1108 = vrot.lane.b32.xlu0 %v1050_v17, %s1609_s14 }
 0x246   : > { %1104 = vrot.lane.b32.xlu1 %v1056_v43, %s1607_s12 }
 0x247   : > { %1080 = vrot.lane.b32.xlu2 %v994_v9, %s1609_s14 }
 0x249   : > { %1138 = vperm.xlu0 %1503, %v433_v42  }
 0x24e   : > { %1084 = vrot.lane.b32.xlu1 %v1002_v18, %s1610_s17 }
 0x24f   : > { %1112 = vrot.lane.b32.xlu2 %v1058_v19, %s1610_s17 }
 0x289   : > { %v1089_v12 = vpop.permute.xlu2 %1088 }
 0x28a   : > { %v1129_v23 = vsel %vm1115_vm7, %v1034_v59, %v1089_v12 }
 0x291   : > { %v1069_v52 = vpop.permute.xlu2 %1068 }
 0x299   : > { %v1101_v20 = vpop.permute.xlu2 %1100 }
 0x29a   : > { %v1065_v29 = vpop.permute.xlu0 %1064 }
 0x2a0   : > { %v1093_v40 = vpop.permute.xlu1 %1092 }
 0x2a1   : > { %v1081_v53 = vpop.permute.xlu2 %1080  ;;  %v1130_v22 = vsel %vm1117_vm8, %v1129_v23, %v1093_v40 }
 0x2a3   : > { %v1097_v56 = vpop.permute.xlu0 %1096 }
 0x2a4   : > { %v1131_v58 = vsel %vm1119_vm9, %v1130_v22, %v1097_v56 }
 0x2a5   : > { %v1132_v30 = vsel %vm1121_vm10, %v1131_v58, %v1101_v20 }
 0x2a8   : > { %v1061_v47 = vpop.permute.xlu1 %1060 }
 0x2a9   : > { %v1116_v62 = vsel %vm1115_vm7, %v978_v1, %v1061_v47  ;;  %v1113_v27 = vpop.permute.xlu2 %1112 }
 0x2aa   : > { %v1118_v8 = vsel %vm1117_vm8, %v1116_v62, %v1065_v29 }
 0x2ab   : > { %v1077_v33 = vpop.permute.xlu0 %1076  ;;  %v1120_v38 = vsel %vm1119_vm9, %v1118_v8, %v1069_v52 }
 0x2b0   : > { %v1073_v45 = vpop.permute.xlu1 %1072 }
 0x2b1   : > { %v1122_v3 = vsel %vm1121_vm10, %v1120_v38, %v1073_v45 }
 0x2b2   : > { %v1124_v16 = vsel %vm1123_vm11, %v1122_v3, %v1077_v33 }
 0x2b3   : > { %v1109_v26 = vpop.permute.xlu0 %1108  ;;  %v1126_v41 = vsel %vm1125_vm12, %v1124_v16, %v1081_v53 }
 0x2b8   : > { %v1105_v6 = vpop.permute.xlu1 %1104 }
 0x2b9   : > { %v1133_v28 = vsel %vm1123_vm11, %v1132_v30, %v1105_v6 }
 0x2ba   : > { %v1134_v35 = vsel %vm1125_vm12, %v1133_v28, %v1109_v26 }
 0x2bb   : > { %v1139_v37 = vpop.permute.xlu0 %1138  ;;  %v1135_v63 = vsel %vm1127_vm13, %v1134_v35, %v1113_v27 }
 0x2bc   : > { %v1142_v39 = vadd.f32 %v1139_v37, %v1135_v63 }
 0x2be   : > { %v1154_v0 = vsel %vm1152_vm14, %v1142_v39, 0.0 }
 0x2c0   : > { %v1085_v34 = vpop.permute.xlu1 %1084 }
 0x2c1   : > { %v1128_v49 = vsel %vm1127_vm13, %v1126_v41, %v1085_v34 }
 0x2c2   : > { %v1141_v7 = vadd.f32 %v1139_v37, %v1128_v49 }
 0x2c4   : > { %v1143_v51 = vpack.c.bf16 %v1142_v39, %v1141_v7  ;;  %v1153_v50 = vsel %vm1152_vm14, %v1141_v7, 0.0 }
 0x2c5   : > { %v1155_v13 = vadd.f32 %v1154_v0, %v1153_v50 }
 0x2c6   : > { %v1145_v57 = vrot.slane %v1143_v51, 2 }
 0x2c7   : > { %1156 = vadd.xlane.f32.xlu1 %v1155_v13 }
 0x2c8   : > { %v1149_v59 = vsel %vm1146_vm15, %v1143_v51, %v1145_v57 }
 0x2c9   : > { %1151 = vst [vmem:[%s331_s28] sm:$0xf] %v1149_v59 }
 0x33a   : > { %v1157_v54 = vpop.xlane.xlu1 %1156 }
 0x33b   : > { %v1158_v60 = vmul.f32 0.00390625, %v1157_v54  ;;  %1162 = vst.msk [vmem:[%s338_s6] sm:$0xf] %vm1161_vm0, %v1157_v54 }
 0x33d   : > { %v1159_v61 = vsub.f32 %v1141_v7, %v1158_v60  ;;  %v1160_v48 = vsub.f32 %v1142_v39, %v1158_v60 }
 0x33f   : > { %v1163_v25 = vmul.f32 %v1159_v61, %v1159_v61  ;;  %v1164_v1 = vmul.f32 %v1160_v48, %v1160_v48 }
 0x341   : > { %v1165_v2 = vsel %vm1152_vm14, %v1163_v25, 0.0  ;;  %v1166_v31 = vsel %vm1152_vm14, %v1164_v1, 0.0 }
 0x342   : > { %v1167_v14 = vadd.f32 %v1166_v31, %v1165_v2 }
 0x344   : > { %1168 = vadd.xlane.f32.xlu2 %v1167_v14 }
 0x3b7   : > { %v1169_v11 = vpop.xlane.xlu2 %1168 }
 0x3b8   : > { %1170 = vst.msk [vmem:[%s345_s8] sm:$0xf] %vm1161_vm0, %v1169_v11 }
 0x3b9 PF: > { %s19_s23 = sadd.s32 1, %s1585_s23   ;;  %s2078_s18 = smov %s1569_s19 }
 0x3ba   : > { %p16_p0 = scmp.ge.s32.totalorder %s19_s23, 4   ;;  %s2079_s19 = smov %s1573_s20 }
 0x3bb   : > { %s2080_s20 = smov %s1690_s30  ;;  %s2081_s21 = smov %s1581_s22 }
 0x3bc   : > { %s2082_s22 = smov %s2084_s25  ;;  %18 = sbr.rel (!%p16_p0) target bundleno = 4 (0x4), region = 102 }
 0x3c1   :  { %1240 = vsyncpa [#allocation4], 1 }
 0x3c2   :  { %1242 = vsyncpa [#allocation4 + $0x1], 1 }

</bundles_post_ra>
